<compile_context>
chip_gen: v7x
topology: tpu7x:2x2x1
jax: 0.10.0
libtpu: 0.0.40
codegen_flags: <defaults>
</compile_context>

<pallas_src>
import jax
import jax.numpy as jnp
import numpy as np
from jax.experimental import pallas as pl
from jax.experimental.pallas import tpu as pltpu

# Make the pure-JAX reference matmuls full f32 so the f32-path tolerance can
# stay tight (XLA's default TPU matmul precision is lower than the kernel's).
jax.config.update("jax_default_matmul_precision", "highest")

INPUT_SIZE = 90
EMB_DIM = 8
HIDDEN_DIM = 64
EPS = 1e-5          # nn.BatchNorm1d default eps
NEG_SLOPE = 0.01    # nn.LeakyReLU default negative_slope
LANE = 128          # packed slab width (one full vreg lane extent)
PSLAB_ROWS = 16     # 13 packed per-channel vectors, padded to a sublane multiple

# Packed parameter-slab row indices (wrapper packing order == kernel slicing order).
_R_EB0, _R_G0, _R_BE0 = 0, 1, 2
_R_EB1, _R_G1, _R_BE1 = 3, 4, 5
_R_EB2, _R_G2, _R_BE2 = 6, 7, 8
_R_EB3 = 9
_R_CB0, _R_CB1, _R_CB2 = 10, 11, 12


# ---------------------------------------------------------------------------
# Kernel helpers (traced inside the Pallas kernel body)
# ---------------------------------------------------------------------------
def _leaky_relu(x):
    # Equivalent to LeakyReLU for slope < 1; one fewer VPU op than cmp+select.
    return jnp.maximum(x, NEG_SLOPE * x)


def _dot(x, w_ref):
    w = w_ref[...]
    # Cast activations to the weight dtype (bf16 path) ; accumulate in f32.
    return jnp.dot(x.astype(w.dtype), w, preferred_element_type=jnp.float32)


def _bn_scale_shift(xh, gamma, beta):
    """Two-pass training-mode BN stats -> folded (scale, shift).  f32 math."""
    mean = jnp.mean(xh, axis=0, keepdims=True)
    var = jnp.mean(jnp.square(xh - mean), axis=0, keepdims=True)
    scale = gamma * jax.lax.rsqrt(var + EPS)
    shift = beta - mean * scale
    return scale, shift


def _bn_train_per_hand(x, gamma, beta, b):
    """x: (2B, C) stacked [hand1 ; hand2].  Per-hand batch statistics, applied
    with one elementwise scale+shift selected by row index (no relayout)."""
    sc1, sh1 = _bn_scale_shift(x[:b], gamma, beta)
    sc2, sh2 = _bn_scale_shift(x[b:], gamma, beta)
    row = jax.lax.broadcasted_iota(jnp.int32, (x.shape[0], 1), 0)
    is_hand1 = row < b
    scale = jnp.where(is_hand1, sc1, sc2)
    shift = jnp.where(is_hand1, sh1, sh2)
    return x * scale + shift


# ---------------------------------------------------------------------------
# Pallas kernel: whole (small) batch + all parameters resident in VMEM,
# single grid point.
# ---------------------------------------------------------------------------
def equity_diff_kernel(
    hand1_ref, hand2_ref,            # (B, 90) each (f32 or bf16)
    ew0, ew1, ew2, ew3,              # encoder weights (90,128)(128,64)(64,32)(32,8)
    cw0a, cw0b, cw1, cw2,            # comparison weights (cw0 pre-split into 2x(8,64))
    pslab,                           # (16, 128) f32: all biases + BN gamma/beta
    out_ref,                         # (B, 128) f32 packed output slab
):
    b = hand1_ref.shape[0]

    # Per-channel parameters: free static slices of the single packed slab.
    eb0 = pslab[_R_EB0:_R_EB0 + 1, :]
    g0 = pslab[_R_G0:_R_G0 + 1, :]
    be0 = pslab[_R_BE0:_R_BE0 + 1, :]
    eb1 = pslab[_R_EB1:_R_EB1 + 1, 0:64]
    g1 = pslab[_R_G1:_R_G1 + 1, 0:64]
    be1 = pslab[_R_BE1:_R_BE1 + 1, 0:64]
    eb2 = pslab[_R_EB2:_R_EB2 + 1, 0:32]
    g2 = pslab[_R_G2:_R_G2 + 1, 0:32]
    be2 = pslab[_R_BE2:_R_BE2 + 1, 0:32]
    eb3 = pslab[_R_EB3:_R_EB3 + 1, 0:EMB_DIM]
    cb0 = pslab[_R_CB0:_R_CB0 + 1, 0:HIDDEN_DIM]
    cb1 = pslab[_R_CB1:_R_CB1 + 1, 0:HIDDEN_DIM // 2]
    cb2 = pslab[_R_CB2:_R_CB2 + 1, 0:1]

    # ----- stacked encoder pass: both hands share every MXU weight load -----
    # Sublane join happens in VMEM (no kernel-external HBM concat pass).
    x = jnp.concatenate([hand1_ref[...], hand2_ref[...]], axis=0)   # (2B, 90)

    h = _leaky_relu(_dot(x, ew0) + eb0)
    h = _bn_train_per_hand(h, g0, be0, b)
    h = _leaky_relu(_dot(h, ew1) + eb1)
    h = _bn_train_per_hand(h, g1, be1, b)
    h = _leaky_relu(_dot(h, ew2) + eb2)
    h = _bn_train_per_hand(h, g2, be2, b)
    emb = _dot(h, ew3) + eb3                                        # (2B, 8) f32

    emb1 = emb[:b]                  # sublane-tile-aligned static slices (B % 8 == 0)
    emb2 = emb[b:]

    # ----- comparison head: split-K matmul instead of lane-axis concat ------
    # (Two (B,8)x(8,64) dots vs one (B,16)x(16,64) dot: kept split-K to avoid
    #  the emb1|emb2 lane relayout; revisit from bundle dump at production B.)
    c = _leaky_relu(_dot(emb1, cw0a) + _dot(emb2, cw0b) + cb0)
    c = _leaky_relu(_dot(c, cw1) + cb1)
    diff = _dot(c, cw2) + cb2                                       # (B, 1)

    # ----- lane-dense packed output: zero once + static lane-slice stores ---
    out_ref[...] = jnp.zeros_like(out_ref)
    out_ref[:, 0:EMB_DIM] = emb1
    out_ref[:, EMB_DIM:2 * EMB_DIM] = emb2
    out_ref[:, 2 * EMB_DIM:2 * EMB_DIM + 1] = diff


# ---------------------------------------------------------------------------
# Wrapper
# ---------------------------------------------------------------------------
def _pack_param_slab(vecs):
    """Pack per-channel vectors into one (PSLAB_ROWS, 128) f32 slab (1 DMA)."""
    rows = []
    for v in vecs:
        v = jnp.asarray(v, jnp.float32).reshape(1, -1)
        rows.append(jnp.pad(v, ((0, 0), (0, LANE - v.shape[1]))))
    rows.append(jnp.zeros((PSLAB_ROWS - len(rows), LANE), jnp.float32))
    return jnp.concatenate(rows, axis=0)


def equity_diff_model(hand1, hand2, params, *, compute_dtype=jnp.float32):
    """compute_dtype=jnp.bfloat16 runs the matmuls in bf16 (f32 accumulation);
    BatchNorm / LeakyReLU always run in f32."""
    B = hand1.shape[0]
    (ew0, eb0, g0, be0, ew1, eb1, g1, be1, ew2, eb2, g2, be2, ew3, eb3,
     cw0, cb0, cw1, cb1, cw2, cb2) = params

    # Pre-split the first comparison weight so the kernel never concatenates
    # emb1|emb2 along lanes.
    cw0a, cw0b = cw0[:EMB_DIM], cw0[EMB_DIM:]

    # All tiny per-channel vectors -> ONE (16,128) f32 slab (single DMA).
    pslab = _pack_param_slab([eb0, g0, be0, eb1, g1, be1, eb2, g2, be2,
                              eb3, cb0, cb1, cb2])

    weights = [w.astype(compute_dtype)
               for w in (ew0, ew1, ew2, ew3, cw0a, cw0b, cw1, cw2)]
    h1 = hand1.astype(compute_dtype)
    h2 = hand2.astype(compute_dtype)

    # NOTE: B a multiple of 8 keeps the in-kernel per-hand slices tile-aligned
    # (still correct otherwise, just slower).  Do NOT pad the batch: training-
    # mode BatchNorm statistics would change.
    vmem = pl.BlockSpec(memory_space=pltpu.MemorySpace.VMEM)
    inputs = [h1, h2, *weights, pslab]

    slab = pl.pallas_call(
        equity_diff_kernel,
        out_shape=jax.ShapeDtypeStruct((B, LANE), jnp.float32),
        in_specs=[vmem] * len(inputs),
        out_specs=vmem,
    )(*inputs)

    emb1 = slab[:, :EMB_DIM]
    emb2 = slab[:, EMB_DIM:2 * EMB_DIM]
    diff = slab[:, 2 * EMB_DIM:2 * EMB_DIM + 1]
    return emb1, emb2, diff


# ---------------------------------------------------------------------------
# Deterministic parameter construction (synthetic init, no checkpoint load)
# ---------------------------------------------------------------------------
def init_params(key):
    params = []
    keys = iter(jax.random.split(key, 32))

    def linear(d_in, d_out):
        w = jax.random.normal(next(keys), (d_in, d_out), jnp.float32) * (1.0 / np.sqrt(d_in))
        b = jax.random.normal(next(keys), (1, d_out), jnp.float32) * 0.05
        return w, b

    def bn(c):
        gamma = 1.0 + 0.1 * jax.random.normal(next(keys), (1, c), jnp.float32)
        beta = 0.1 * jax.random.normal(next(keys), (1, c), jnp.float32)
        return gamma, beta

    # Encoder
    for (d_in, d_out), bn_c in zip(
        [(INPUT_SIZE, 128), (128, 64), (64, 32), (32, EMB_DIM)],
        [128, 64, 32, None],
    ):
        w, b = linear(d_in, d_out)
        params += [w, b]
        if bn_c is not None:
            gamma, beta = bn(bn_c)
            params += [gamma, beta]

    # Comparison
    for d_in, d_out in [(2 * EMB_DIM, HIDDEN_DIM),
                        (HIDDEN_DIM, HIDDEN_DIM // 2),
                        (HIDDEN_DIM // 2, 1)]:
        w, b = linear(d_in, d_out)
        params += [w, b]

    return params


# ---------------------------------------------------------------------------
# Pure-JAX reference (per-hand encoder + concat head, like the PyTorch module)
# ---------------------------------------------------------------------------
def _bn_ref(x, gamma, beta):
    mean = jnp.mean(x, axis=0, keepdims=True)
    var = jnp.mean((x - mean) ** 2, axis=0, keepdims=True)
    return (x - mean) * jax.lax.rsqrt(var + EPS) * gamma + beta


def _lrelu_ref(x):
    return jnp.where(x >= 0, x, NEG_SLOPE * x)


def reference(hand1, hand2, p):
    (ew0, eb0, g0, be0, ew1, eb1, g1, be1, ew2, eb2, g2, be2, ew3, eb3,
     cw0, cb0, cw1, cb1, cw2, cb2) = p

    def enc(x):
        h = _lrelu_ref(x @ ew0 + eb0)
        h = _bn_ref(h, g0, be0)
        h = _lrelu_ref(h @ ew1 + eb1)
        h = _bn_ref(h, g1, be1)
        h = _lrelu_ref(h @ ew2 + eb2)
        h = _bn_ref(h, g2, be2)
        return h @ ew3 + eb3

    e1, e2 = enc(hand1), enc(hand2)
    c = jnp.concatenate([e1, e2], axis=1)
    h = _lrelu_ref(c @ cw0 + cb0)
    h = _lrelu_ref(h @ cw1 + cb1)
    return e1, e2, h @ cw2 + cb2


if __name__ == "__main__":
    key = jax.random.PRNGKey(0)
    k_h1, k_h2, k_p = jax.random.split(key, 3)

    B = 8  # multiple of 8 -> per-hand sublane slices stay (8,128)-tile aligned
    hand1 = jax.random.normal(k_h1, (B, INPUT_SIZE), jnp.float32)
    hand2 = jax.random.normal(k_h2, (B, INPUT_SIZE), jnp.float32)
    params = init_params(k_p)

    r1, r2, rd = reference(hand1, hand2, params)

    # ---- f32 matmul path: tight-tolerance semantics check ----
    emb1, emb2, equity_diff = equity_diff_model(hand1, hand2, params,
                                                compute_dtype=jnp.float32)
    jax.block_until_ready((emb1, emb2, equity_diff))
    np.testing.assert_allclose(np.asarray(emb1), np.asarray(r1), rtol=1e-3, atol=1e-3)
    np.testing.assert_allclose(np.asarray(emb2), np.asarray(r2), rtol=1e-3, atol=1e-3)
    np.testing.assert_allclose(np.asarray(equity_diff), np.asarray(rd), rtol=1e-3, atol=1e-3)

    # ---- bf16 matmul path (MXU-native on v6e/v7x): relaxed tolerance ----
    e1b, e2b, db = equity_diff_model(hand1, hand2, params,
                                     compute_dtype=jnp.bfloat16)
    jax.block_until_ready((e1b, e2b, db))
    np.testing.assert_allclose(np.asarray(e1b), np.asarray(r1), rtol=5e-2, atol=5e-2)
    np.testing.assert_allclose(np.asarray(e2b), np.asarray(r2), rtol=5e-2, atol=5e-2)
    np.testing.assert_allclose(np.asarray(db), np.asarray(rd), rtol=5e-2, atol=5e-2)

    assert emb1.shape == (B, EMB_DIM) and emb2.shape == (B, EMB_DIM)
    assert equity_diff.shape == (B, 1)

    print("KERNEL_OK")
</pallas_src>

<mosaic_0001>
module attributes {stable_mosaic.version = 11 : i64} {
  func.func @equity_diff_kernel(%arg0: memref<8x90xf32, #tpu.memory_space<vmem>>, %arg1: memref<8x90xf32, #tpu.memory_space<vmem>>, %arg2: memref<90x128xf32, #tpu.memory_space<vmem>>, %arg3: memref<128x64xf32, #tpu.memory_space<vmem>>, %arg4: memref<64x32xf32, #tpu.memory_space<vmem>>, %arg5: memref<32x8xf32, #tpu.memory_space<vmem>>, %arg6: memref<8x64xf32, #tpu.memory_space<vmem>>, %arg7: memref<8x64xf32, #tpu.memory_space<vmem>>, %arg8: memref<64x32xf32, #tpu.memory_space<vmem>>, %arg9: memref<32x1xf32, #tpu.memory_space<vmem>>, %arg10: memref<16x128xf32, #tpu.memory_space<vmem>>, %arg11: memref<8x128xf32, #tpu.memory_space<vmem>>) attributes {dimension_semantics = [], scalar_prefetch = 0 : i64, scratch_operands = 0 : i64, tpu.core_type = #tpu.core_type<tc>} {
    %c0 = arith.constant 0 : index
    %c0_0 = arith.constant 0 : index
    %0 = vector.load %arg10[%c0, %c0_0] : memref<16x128xf32, #tpu.memory_space<vmem>>, vector<1x128xf32>
    %c1 = arith.constant 1 : index
    %c0_1 = arith.constant 0 : index
    %1 = vector.load %arg10[%c1, %c0_1] : memref<16x128xf32, #tpu.memory_space<vmem>>, vector<1x128xf32>
    %c2 = arith.constant 2 : index
    %c0_2 = arith.constant 0 : index
    %2 = vector.load %arg10[%c2, %c0_2] : memref<16x128xf32, #tpu.memory_space<vmem>>, vector<1x128xf32>
    %c3 = arith.constant 3 : index
    %c0_3 = arith.constant 0 : index
    %3 = vector.load %arg10[%c3, %c0_3] : memref<16x128xf32, #tpu.memory_space<vmem>>, vector<1x64xf32>
    %c4 = arith.constant 4 : index
    %c0_4 = arith.constant 0 : index
    %4 = vector.load %arg10[%c4, %c0_4] : memref<16x128xf32, #tpu.memory_space<vmem>>, vector<1x64xf32>
    %c5 = arith.constant 5 : index
    %c0_5 = arith.constant 0 : index
    %5 = vector.load %arg10[%c5, %c0_5] : memref<16x128xf32, #tpu.memory_space<vmem>>, vector<1x64xf32>
    %c6 = arith.constant 6 : index
    %c0_6 = arith.constant 0 : index
    %6 = vector.load %arg10[%c6, %c0_6] : memref<16x128xf32, #tpu.memory_space<vmem>>, vector<1x32xf32>
    %c7 = arith.constant 7 : index
    %c0_7 = arith.constant 0 : index
    %7 = vector.load %arg10[%c7, %c0_7] : memref<16x128xf32, #tpu.memory_space<vmem>>, vector<1x32xf32>
    %c8 = arith.constant 8 : index
    %c0_8 = arith.constant 0 : index
    %8 = vector.load %arg10[%c8, %c0_8] : memref<16x128xf32, #tpu.memory_space<vmem>>, vector<1x32xf32>
    %c9 = arith.constant 9 : index
    %c0_9 = arith.constant 0 : index
    %9 = vector.load %arg10[%c9, %c0_9] : memref<16x128xf32, #tpu.memory_space<vmem>>, vector<1x8xf32>
    %c10 = arith.constant 10 : index
    %c0_10 = arith.constant 0 : index
    %10 = vector.load %arg10[%c10, %c0_10] : memref<16x128xf32, #tpu.memory_space<vmem>>, vector<1x64xf32>
    %c11 = arith.constant 11 : index
    %c0_11 = arith.constant 0 : index
    %11 = vector.load %arg10[%c11, %c0_11] : memref<16x128xf32, #tpu.memory_space<vmem>>, vector<1x32xf32>
    %c12 = arith.constant 12 : index
    %c0_12 = arith.constant 0 : index
    %12 = vector.load %arg10[%c12, %c0_12] : memref<16x128xf32, #tpu.memory_space<vmem>>, vector<1x1xf32>
    %c0_13 = arith.constant 0 : index
    %c0_14 = arith.constant 0 : index
    %13 = vector.load %arg0[%c0_13, %c0_14] : memref<8x90xf32, #tpu.memory_space<vmem>>, vector<8x90xf32>
    %c0_15 = arith.constant 0 : index
    %c0_16 = arith.constant 0 : index
    %14 = vector.load %arg1[%c0_15, %c0_16] : memref<8x90xf32, #tpu.memory_space<vmem>>, vector<8x90xf32>
    %15 = tpu.concatenate %13, %14 in 0 : vector<8x90xf32>, vector<8x90xf32> -> vector<16x90xf32>
    %c0_17 = arith.constant 0 : index
    %c0_18 = arith.constant 0 : index
    %16 = vector.load %arg2[%c0_17, %c0_18] : memref<90x128xf32, #tpu.memory_space<vmem>>, vector<90x128xf32>
    %cst = arith.constant dense<0.000000e+00> : vector<16x128xf32>
    %17 = tpu.matmul %15, %16, %cst {dimension_numbers = #tpu.dot_dimension_numbers<[1], [0], [0], [1], [0, 0, 1, 1], [], []>, precision = #tpu.contract_precision<fp32>} : vector<16x90xf32>, vector<90x128xf32>, vector<16x128xf32> -> vector<16x128xf32>
    %18 = vector.broadcast %0 : vector<1x128xf32> to vector<16x128xf32>
    %19 = arith.addf %17, %18 : vector<16x128xf32>
    %cst_19 = arith.constant 0.00999999977 : f32
    %20 = vector.broadcast %cst_19 : f32 to vector<16x128xf32>
    %21 = arith.mulf %20, %19 : vector<16x128xf32>
    %22 = arith.maximumf %19, %21 : vector<16x128xf32>
    %23 = vector.extract_strided_slice %22 {offsets = [0, 0], sizes = [8, 128], strides = [1, 1]} : vector<16x128xf32> to vector<8x128xf32>
    %cst_20 = arith.constant dense<0.000000e+00> : vector<128xf32>
    %24 = vector.multi_reduction <add>, %23, %cst_20 [0] : vector<8x128xf32> to vector<128xf32>
    %25 = vector.shape_cast %24 : vector<128xf32> to vector<1x128xf32>
    %cst_21 = arith.constant 8.000000e+00 : f32
    %26 = vector.broadcast %cst_21 : f32 to vector<1x128xf32>
    %27 = arith.divf %25, %26 : vector<1x128xf32>
    %28 = vector.broadcast %27 : vector<1x128xf32> to vector<8x128xf32>
    %29 = arith.subf %23, %28 : vector<8x128xf32>
    %30 = arith.mulf %29, %29 : vector<8x128xf32>
    %cst_22 = arith.constant dense<0.000000e+00> : vector<128xf32>
    %31 = vector.multi_reduction <add>, %30, %cst_22 [0] : vector<8x128xf32> to vector<128xf32>
    %32 = vector.shape_cast %31 : vector<128xf32> to vector<1x128xf32>
    %cst_23 = arith.constant 8.000000e+00 : f32
    %33 = vector.broadcast %cst_23 : f32 to vector<1x128xf32>
    %34 = arith.divf %32, %33 : vector<1x128xf32>
    %cst_24 = arith.constant 9.99999974E-6 : f32
    %35 = vector.broadcast %cst_24 : f32 to vector<1x128xf32>
    %36 = arith.addf %34, %35 : vector<1x128xf32>
    %37 = math.rsqrt %36 : vector<1x128xf32>
    %38 = arith.mulf %1, %37 : vector<1x128xf32>
    %39 = arith.mulf %27, %38 : vector<1x128xf32>
    %40 = arith.subf %2, %39 : vector<1x128xf32>
    %41 = vector.extract_strided_slice %22 {offsets = [8, 0], sizes = [8, 128], strides = [1, 1]} : vector<16x128xf32> to vector<8x128xf32>
    %cst_25 = arith.constant dense<0.000000e+00> : vector<128xf32>
    %42 = vector.multi_reduction <add>, %41, %cst_25 [0] : vector<8x128xf32> to vector<128xf32>
    %43 = vector.shape_cast %42 : vector<128xf32> to vector<1x128xf32>
    %cst_26 = arith.constant 8.000000e+00 : f32
    %44 = vector.broadcast %cst_26 : f32 to vector<1x128xf32>
    %45 = arith.divf %43, %44 : vector<1x128xf32>
    %46 = vector.broadcast %45 : vector<1x128xf32> to vector<8x128xf32>
    %47 = arith.subf %41, %46 : vector<8x128xf32>
    %48 = arith.mulf %47, %47 : vector<8x128xf32>
    %cst_27 = arith.constant dense<0.000000e+00> : vector<128xf32>
    %49 = vector.multi_reduction <add>, %48, %cst_27 [0] : vector<8x128xf32> to vector<128xf32>
    %50 = vector.shape_cast %49 : vector<128xf32> to vector<1x128xf32>
    %cst_28 = arith.constant 8.000000e+00 : f32
    %51 = vector.broadcast %cst_28 : f32 to vector<1x128xf32>
    %52 = arith.divf %50, %51 : vector<1x128xf32>
    %cst_29 = arith.constant 9.99999974E-6 : f32
    %53 = vector.broadcast %cst_29 : f32 to vector<1x128xf32>
    %54 = arith.addf %52, %53 : vector<1x128xf32>
    %55 = math.rsqrt %54 : vector<1x128xf32>
    %56 = arith.mulf %1, %55 : vector<1x128xf32>
    %57 = arith.mulf %45, %56 : vector<1x128xf32>
    %58 = arith.subf %2, %57 : vector<1x128xf32>
    %59 = tpu.iota {dimensions = array<i32: 0>} : vector<16x1xi32>
    %c8_i32 = arith.constant 8 : i32
    %60 = vector.broadcast %c8_i32 : i32 to vector<16x1xi32>
    %61 = arith.cmpi slt, %59, %60 : vector<16x1xi32>
    %62 = vector.shape_cast %61 : vector<16x1xi1> to vector<16x1xi1>
    %63 = vector.broadcast %62 : vector<16x1xi1> to vector<16x128xi1>
    %64 = vector.shape_cast %38 : vector<1x128xf32> to vector<1x128xf32>
    %65 = vector.broadcast %64 : vector<1x128xf32> to vector<16x128xf32>
    %66 = vector.shape_cast %56 : vector<1x128xf32> to vector<1x128xf32>
    %67 = vector.broadcast %66 : vector<1x128xf32> to vector<16x128xf32>
    %68 = arith.select %63, %65, %67 : vector<16x128xi1>, vector<16x128xf32>
    %69 = vector.shape_cast %61 : vector<16x1xi1> to vector<16x1xi1>
    %70 = vector.broadcast %69 : vector<16x1xi1> to vector<16x128xi1>
    %71 = vector.shape_cast %40 : vector<1x128xf32> to vector<1x128xf32>
    %72 = vector.broadcast %71 : vector<1x128xf32> to vector<16x128xf32>
    %73 = vector.shape_cast %58 : vector<1x128xf32> to vector<1x128xf32>
    %74 = vector.broadcast %73 : vector<1x128xf32> to vector<16x128xf32>
    %75 = arith.select %70, %72, %74 : vector<16x128xi1>, vector<16x128xf32>
    %76 = arith.mulf %22, %68 : vector<16x128xf32>
    %77 = arith.addf %76, %75 : vector<16x128xf32>
    %c0_30 = arith.constant 0 : index
    %c0_31 = arith.constant 0 : index
    %78 = vector.load %arg3[%c0_30, %c0_31] : memref<128x64xf32, #tpu.memory_space<vmem>>, vector<128x64xf32>
    %cst_32 = arith.constant dense<0.000000e+00> : vector<16x64xf32>
    %79 = tpu.matmul %77, %78, %cst_32 {dimension_numbers = #tpu.dot_dimension_numbers<[1], [0], [0], [1], [0, 0, 1, 1], [], []>, precision = #tpu.contract_precision<fp32>} : vector<16x128xf32>, vector<128x64xf32>, vector<16x64xf32> -> vector<16x64xf32>
    %80 = vector.broadcast %3 : vector<1x64xf32> to vector<16x64xf32>
    %81 = arith.addf %79, %80 : vector<16x64xf32>
    %cst_33 = arith.constant 0.00999999977 : f32
    %82 = vector.broadcast %cst_33 : f32 to vector<16x64xf32>
    %83 = arith.mulf %82, %81 : vector<16x64xf32>
    %84 = arith.maximumf %81, %83 : vector<16x64xf32>
    %85 = vector.extract_strided_slice %84 {offsets = [0, 0], sizes = [8, 64], strides = [1, 1]} : vector<16x64xf32> to vector<8x64xf32>
    %cst_34 = arith.constant dense<0.000000e+00> : vector<64xf32>
    %86 = vector.multi_reduction <add>, %85, %cst_34 [0] : vector<8x64xf32> to vector<64xf32>
    %87 = vector.shape_cast %86 : vector<64xf32> to vector<1x64xf32>
    %cst_35 = arith.constant 8.000000e+00 : f32
    %88 = vector.broadcast %cst_35 : f32 to vector<1x64xf32>
    %89 = arith.divf %87, %88 : vector<1x64xf32>
    %90 = vector.broadcast %89 : vector<1x64xf32> to vector<8x64xf32>
    %91 = arith.subf %85, %90 : vector<8x64xf32>
    %92 = arith.mulf %91, %91 : vector<8x64xf32>
    %cst_36 = arith.constant dense<0.000000e+00> : vector<64xf32>
    %93 = vector.multi_reduction <add>, %92, %cst_36 [0] : vector<8x64xf32> to vector<64xf32>
    %94 = vector.shape_cast %93 : vector<64xf32> to vector<1x64xf32>
    %cst_37 = arith.constant 8.000000e+00 : f32
    %95 = vector.broadcast %cst_37 : f32 to vector<1x64xf32>
    %96 = arith.divf %94, %95 : vector<1x64xf32>
    %cst_38 = arith.constant 9.99999974E-6 : f32
    %97 = vector.broadcast %cst_38 : f32 to vector<1x64xf32>
    %98 = arith.addf %96, %97 : vector<1x64xf32>
    %99 = math.rsqrt %98 : vector<1x64xf32>
    %100 = arith.mulf %4, %99 : vector<1x64xf32>
    %101 = arith.mulf %89, %100 : vector<1x64xf32>
    %102 = arith.subf %5, %101 : vector<1x64xf32>
    %103 = vector.extract_strided_slice %84 {offsets = [8, 0], sizes = [8, 64], strides = [1, 1]} : vector<16x64xf32> to vector<8x64xf32>
    %cst_39 = arith.constant dense<0.000000e+00> : vector<64xf32>
    %104 = vector.multi_reduction <add>, %103, %cst_39 [0] : vector<8x64xf32> to vector<64xf32>
    %105 = vector.shape_cast %104 : vector<64xf32> to vector<1x64xf32>
    %cst_40 = arith.constant 8.000000e+00 : f32
    %106 = vector.broadcast %cst_40 : f32 to vector<1x64xf32>
    %107 = arith.divf %105, %106 : vector<1x64xf32>
    %108 = vector.broadcast %107 : vector<1x64xf32> to vector<8x64xf32>
    %109 = arith.subf %103, %108 : vector<8x64xf32>
    %110 = arith.mulf %109, %109 : vector<8x64xf32>
    %cst_41 = arith.constant dense<0.000000e+00> : vector<64xf32>
    %111 = vector.multi_reduction <add>, %110, %cst_41 [0] : vector<8x64xf32> to vector<64xf32>
    %112 = vector.shape_cast %111 : vector<64xf32> to vector<1x64xf32>
    %cst_42 = arith.constant 8.000000e+00 : f32
    %113 = vector.broadcast %cst_42 : f32 to vector<1x64xf32>
    %114 = arith.divf %112, %113 : vector<1x64xf32>
    %cst_43 = arith.constant 9.99999974E-6 : f32
    %115 = vector.broadcast %cst_43 : f32 to vector<1x64xf32>
    %116 = arith.addf %114, %115 : vector<1x64xf32>
    %117 = math.rsqrt %116 : vector<1x64xf32>
    %118 = arith.mulf %4, %117 : vector<1x64xf32>
    %119 = arith.mulf %107, %118 : vector<1x64xf32>
    %120 = arith.subf %5, %119 : vector<1x64xf32>
    %121 = tpu.iota {dimensions = array<i32: 0>} : vector<16x1xi32>
    %c8_i32_44 = arith.constant 8 : i32
    %122 = vector.broadcast %c8_i32_44 : i32 to vector<16x1xi32>
    %123 = arith.cmpi slt, %121, %122 : vector<16x1xi32>
    %124 = vector.shape_cast %123 : vector<16x1xi1> to vector<16x1xi1>
    %125 = vector.broadcast %124 : vector<16x1xi1> to vector<16x64xi1>
    %126 = vector.shape_cast %100 : vector<1x64xf32> to vector<1x64xf32>
    %127 = vector.broadcast %126 : vector<1x64xf32> to vector<16x64xf32>
    %128 = vector.shape_cast %118 : vector<1x64xf32> to vector<1x64xf32>
    %129 = vector.broadcast %128 : vector<1x64xf32> to vector<16x64xf32>
    %130 = arith.select %125, %127, %129 : vector<16x64xi1>, vector<16x64xf32>
    %131 = vector.shape_cast %123 : vector<16x1xi1> to vector<16x1xi1>
    %132 = vector.broadcast %131 : vector<16x1xi1> to vector<16x64xi1>
    %133 = vector.shape_cast %102 : vector<1x64xf32> to vector<1x64xf32>
    %134 = vector.broadcast %133 : vector<1x64xf32> to vector<16x64xf32>
    %135 = vector.shape_cast %120 : vector<1x64xf32> to vector<1x64xf32>
    %136 = vector.broadcast %135 : vector<1x64xf32> to vector<16x64xf32>
    %137 = arith.select %132, %134, %136 : vector<16x64xi1>, vector<16x64xf32>
    %138 = arith.mulf %84, %130 : vector<16x64xf32>
    %139 = arith.addf %138, %137 : vector<16x64xf32>
    %c0_45 = arith.constant 0 : index
    %c0_46 = arith.constant 0 : index
    %140 = vector.load %arg4[%c0_45, %c0_46] : memref<64x32xf32, #tpu.memory_space<vmem>>, vector<64x32xf32>
    %cst_47 = arith.constant dense<0.000000e+00> : vector<16x32xf32>
    %141 = tpu.matmul %139, %140, %cst_47 {dimension_numbers = #tpu.dot_dimension_numbers<[1], [0], [0], [1], [0, 0, 1, 1], [], []>, precision = #tpu.contract_precision<fp32>} : vector<16x64xf32>, vector<64x32xf32>, vector<16x32xf32> -> vector<16x32xf32>
    %142 = vector.broadcast %6 : vector<1x32xf32> to vector<16x32xf32>
    %143 = arith.addf %141, %142 : vector<16x32xf32>
    %cst_48 = arith.constant 0.00999999977 : f32
    %144 = vector.broadcast %cst_48 : f32 to vector<16x32xf32>
    %145 = arith.mulf %144, %143 : vector<16x32xf32>
    %146 = arith.maximumf %143, %145 : vector<16x32xf32>
    %147 = vector.extract_strided_slice %146 {offsets = [0, 0], sizes = [8, 32], strides = [1, 1]} : vector<16x32xf32> to vector<8x32xf32>
    %cst_49 = arith.constant dense<0.000000e+00> : vector<32xf32>
    %148 = vector.multi_reduction <add>, %147, %cst_49 [0] : vector<8x32xf32> to vector<32xf32>
    %149 = vector.shape_cast %148 : vector<32xf32> to vector<1x32xf32>
    %cst_50 = arith.constant 8.000000e+00 : f32
    %150 = vector.broadcast %cst_50 : f32 to vector<1x32xf32>
    %151 = arith.divf %149, %150 : vector<1x32xf32>
    %152 = vector.broadcast %151 : vector<1x32xf32> to vector<8x32xf32>
    %153 = arith.subf %147, %152 : vector<8x32xf32>
    %154 = arith.mulf %153, %153 : vector<8x32xf32>
    %cst_51 = arith.constant dense<0.000000e+00> : vector<32xf32>
    %155 = vector.multi_reduction <add>, %154, %cst_51 [0] : vector<8x32xf32> to vector<32xf32>
    %156 = vector.shape_cast %155 : vector<32xf32> to vector<1x32xf32>
    %cst_52 = arith.constant 8.000000e+00 : f32
    %157 = vector.broadcast %cst_52 : f32 to vector<1x32xf32>
    %158 = arith.divf %156, %157 : vector<1x32xf32>
    %cst_53 = arith.constant 9.99999974E-6 : f32
    %159 = vector.broadcast %cst_53 : f32 to vector<1x32xf32>
    %160 = arith.addf %158, %159 : vector<1x32xf32>
    %161 = math.rsqrt %160 : vector<1x32xf32>
    %162 = arith.mulf %7, %161 : vector<1x32xf32>
    %163 = arith.mulf %151, %162 : vector<1x32xf32>
    %164 = arith.subf %8, %163 : vector<1x32xf32>
    %165 = vector.extract_strided_slice %146 {offsets = [8, 0], sizes = [8, 32], strides = [1, 1]} : vector<16x32xf32> to vector<8x32xf32>
    %cst_54 = arith.constant dense<0.000000e+00> : vector<32xf32>
    %166 = vector.multi_reduction <add>, %165, %cst_54 [0] : vector<8x32xf32> to vector<32xf32>
    %167 = vector.shape_cast %166 : vector<32xf32> to vector<1x32xf32>
    %cst_55 = arith.constant 8.000000e+00 : f32
    %168 = vector.broadcast %cst_55 : f32 to vector<1x32xf32>
    %169 = arith.divf %167, %168 : vector<1x32xf32>
    %170 = vector.broadcast %169 : vector<1x32xf32> to vector<8x32xf32>
    %171 = arith.subf %165, %170 : vector<8x32xf32>
    %172 = arith.mulf %171, %171 : vector<8x32xf32>
    %cst_56 = arith.constant dense<0.000000e+00> : vector<32xf32>
    %173 = vector.multi_reduction <add>, %172, %cst_56 [0] : vector<8x32xf32> to vector<32xf32>
    %174 = vector.shape_cast %173 : vector<32xf32> to vector<1x32xf32>
    %cst_57 = arith.constant 8.000000e+00 : f32
    %175 = vector.broadcast %cst_57 : f32 to vector<1x32xf32>
    %176 = arith.divf %174, %175 : vector<1x32xf32>
    %cst_58 = arith.constant 9.99999974E-6 : f32
    %177 = vector.broadcast %cst_58 : f32 to vector<1x32xf32>
    %178 = arith.addf %176, %177 : vector<1x32xf32>
    %179 = math.rsqrt %178 : vector<1x32xf32>
    %180 = arith.mulf %7, %179 : vector<1x32xf32>
    %181 = arith.mulf %169, %180 : vector<1x32xf32>
    %182 = arith.subf %8, %181 : vector<1x32xf32>
    %183 = tpu.iota {dimensions = array<i32: 0>} : vector<16x1xi32>
    %c8_i32_59 = arith.constant 8 : i32
    %184 = vector.broadcast %c8_i32_59 : i32 to vector<16x1xi32>
    %185 = arith.cmpi slt, %183, %184 : vector<16x1xi32>
    %186 = vector.shape_cast %185 : vector<16x1xi1> to vector<16x1xi1>
    %187 = vector.broadcast %186 : vector<16x1xi1> to vector<16x32xi1>
    %188 = vector.shape_cast %162 : vector<1x32xf32> to vector<1x32xf32>
    %189 = vector.broadcast %188 : vector<1x32xf32> to vector<16x32xf32>
    %190 = vector.shape_cast %180 : vector<1x32xf32> to vector<1x32xf32>
    %191 = vector.broadcast %190 : vector<1x32xf32> to vector<16x32xf32>
    %192 = arith.select %187, %189, %191 : vector<16x32xi1>, vector<16x32xf32>
    %193 = vector.shape_cast %185 : vector<16x1xi1> to vector<16x1xi1>
    %194 = vector.broadcast %193 : vector<16x1xi1> to vector<16x32xi1>
    %195 = vector.shape_cast %164 : vector<1x32xf32> to vector<1x32xf32>
    %196 = vector.broadcast %195 : vector<1x32xf32> to vector<16x32xf32>
    %197 = vector.shape_cast %182 : vector<1x32xf32> to vector<1x32xf32>
    %198 = vector.broadcast %197 : vector<1x32xf32> to vector<16x32xf32>
    %199 = arith.select %194, %196, %198 : vector<16x32xi1>, vector<16x32xf32>
    %200 = arith.mulf %146, %192 : vector<16x32xf32>
    %201 = arith.addf %200, %199 : vector<16x32xf32>
    %c0_60 = arith.constant 0 : index
    %c0_61 = arith.constant 0 : index
    %202 = vector.load %arg5[%c0_60, %c0_61] : memref<32x8xf32, #tpu.memory_space<vmem>>, vector<32x8xf32>
    %cst_62 = arith.constant dense<0.000000e+00> : vector<16x8xf32>
    %203 = tpu.matmul %201, %202, %cst_62 {dimension_numbers = #tpu.dot_dimension_numbers<[1], [0], [0], [1], [0, 0, 1, 1], [], []>, precision = #tpu.contract_precision<fp32>} : vector<16x32xf32>, vector<32x8xf32>, vector<16x8xf32> -> vector<16x8xf32>
    %204 = vector.broadcast %9 : vector<1x8xf32> to vector<16x8xf32>
    %205 = arith.addf %203, %204 : vector<16x8xf32>
    %206 = vector.extract_strided_slice %205 {offsets = [0, 0], sizes = [8, 8], strides = [1, 1]} : vector<16x8xf32> to vector<8x8xf32>
    %207 = vector.extract_strided_slice %205 {offsets = [8, 0], sizes = [8, 8], strides = [1, 1]} : vector<16x8xf32> to vector<8x8xf32>
    %c0_63 = arith.constant 0 : index
    %c0_64 = arith.constant 0 : index
    %208 = vector.load %arg6[%c0_63, %c0_64] : memref<8x64xf32, #tpu.memory_space<vmem>>, vector<8x64xf32>
    %cst_65 = arith.constant dense<0.000000e+00> : vector<8x64xf32>
    %209 = tpu.matmul %206, %208, %cst_65 {dimension_numbers = #tpu.dot_dimension_numbers<[1], [0], [0], [1], [0, 0, 1, 1], [], []>, precision = #tpu.contract_precision<fp32>} : vector<8x8xf32>, vector<8x64xf32>, vector<8x64xf32> -> vector<8x64xf32>
    %c0_66 = arith.constant 0 : index
    %c0_67 = arith.constant 0 : index
    %210 = vector.load %arg7[%c0_66, %c0_67] : memref<8x64xf32, #tpu.memory_space<vmem>>, vector<8x64xf32>
    %cst_68 = arith.constant dense<0.000000e+00> : vector<8x64xf32>
    %211 = tpu.matmul %207, %210, %cst_68 {dimension_numbers = #tpu.dot_dimension_numbers<[1], [0], [0], [1], [0, 0, 1, 1], [], []>, precision = #tpu.contract_precision<fp32>} : vector<8x8xf32>, vector<8x64xf32>, vector<8x64xf32> -> vector<8x64xf32>
    %212 = arith.addf %209, %211 : vector<8x64xf32>
    %213 = vector.broadcast %10 : vector<1x64xf32> to vector<8x64xf32>
    %214 = arith.addf %212, %213 : vector<8x64xf32>
    %cst_69 = arith.constant 0.00999999977 : f32
    %215 = vector.broadcast %cst_69 : f32 to vector<8x64xf32>
    %216 = arith.mulf %215, %214 : vector<8x64xf32>
    %217 = arith.maximumf %214, %216 : vector<8x64xf32>
    %c0_70 = arith.constant 0 : index
    %c0_71 = arith.constant 0 : index
    %218 = vector.load %arg8[%c0_70, %c0_71] : memref<64x32xf32, #tpu.memory_space<vmem>>, vector<64x32xf32>
    %cst_72 = arith.constant dense<0.000000e+00> : vector<8x32xf32>
    %219 = tpu.matmul %217, %218, %cst_72 {dimension_numbers = #tpu.dot_dimension_numbers<[1], [0], [0], [1], [0, 0, 1, 1], [], []>, precision = #tpu.contract_precision<fp32>} : vector<8x64xf32>, vector<64x32xf32>, vector<8x32xf32> -> vector<8x32xf32>
    %220 = vector.broadcast %11 : vector<1x32xf32> to vector<8x32xf32>
    %221 = arith.addf %219, %220 : vector<8x32xf32>
    %cst_73 = arith.constant 0.00999999977 : f32
    %222 = vector.broadcast %cst_73 : f32 to vector<8x32xf32>
    %223 = arith.mulf %222, %221 : vector<8x32xf32>
    %224 = arith.maximumf %221, %223 : vector<8x32xf32>
    %c0_74 = arith.constant 0 : index
    %c0_75 = arith.constant 0 : index
    %225 = vector.load %arg9[%c0_74, %c0_75] : memref<32x1xf32, #tpu.memory_space<vmem>>, vector<32x1xf32>
    %cst_76 = arith.constant dense<0.000000e+00> : vector<8x1xf32>
    %226 = tpu.matmul %224, %225, %cst_76 {dimension_numbers = #tpu.dot_dimension_numbers<[1], [0], [0], [1], [0, 0, 1, 1], [], []>, precision = #tpu.contract_precision<fp32>} : vector<8x32xf32>, vector<32x1xf32>, vector<8x1xf32> -> vector<8x1xf32>
    %227 = vector.broadcast %12 : vector<1x1xf32> to vector<8x1xf32>
    %228 = arith.addf %226, %227 : vector<8x1xf32>
    %cst_77 = arith.constant 0.000000e+00 : f32
    %229 = vector.broadcast %cst_77 : f32 to vector<8x128xf32>
    %c0_78 = arith.constant 0 : index
    %c0_79 = arith.constant 0 : index
    %230 = vector.load %arg11[%c0_78, %c0_79] : memref<8x128xf32, #tpu.memory_space<vmem>>, vector<8x128xf32>
    tpu.vector_store %arg11[%c0_78, %c0_79], %229 {strides = array<i32>} : memref<8x128xf32, #tpu.memory_space<vmem>>, vector<8x128xf32>,
    %c0_80 = arith.constant 0 : index
    %c0_81 = arith.constant 0 : index
    %231 = vector.load %arg11[%c0_80, %c0_81] : memref<8x128xf32, #tpu.memory_space<vmem>>, vector<8x8xf32>
    tpu.vector_store %arg11[%c0_80, %c0_81], %206 {strides = array<i32>} : memref<8x128xf32, #tpu.memory_space<vmem>>, vector<8x8xf32>,
    %c0_82 = arith.constant 0 : index
    %c8_83 = arith.constant 8 : index
    %232 = vector.load %arg11[%c0_82, %c8_83] : memref<8x128xf32, #tpu.memory_space<vmem>>, vector<8x8xf32>
    tpu.vector_store %arg11[%c0_82, %c8_83], %207 {strides = array<i32>} : memref<8x128xf32, #tpu.memory_space<vmem>>, vector<8x8xf32>,
    %c0_84 = arith.constant 0 : index
    %c16 = arith.constant 16 : index
    %233 = vector.load %arg11[%c0_84, %c16] : memref<8x128xf32, #tpu.memory_space<vmem>>, vector<8x1xf32>
    tpu.vector_store %arg11[%c0_84, %c16], %228 {strides = array<i32>} : memref<8x128xf32, #tpu.memory_space<vmem>>, vector<8x1xf32>,
    return
  }
}

</mosaic_0001>

<bundles_post_ra>
// kernel: tpu_custom_call.1
= control target key start
LH: loop header
LB: loop body
LE: loop exit
PB: predicated region body
PF: predicated region fallthrough
CT: control target
= control target key end

     0   :  { %vm77_vm0 = vcmask 1041408   ;;  %vm70_vm1 = vcmask 736256   ;;  %s7806_s0 = inlined_call_operand.vmem [shape: f32[8,90], index: 0, kind: input, shape index: {}]   ;;  %s7807_s1 = inlined_call_operand.vmem [shape: f32[8,90], index: 1, kind: input, shape index: {}]   ;;  %s7808_s2 = inlined_call_operand.vmem [shape: f32[90,128], index: 2, kind: input, shape index: {}]   ;;  %s7809_s3 = inlined_call_operand.vmem [shape: f32[128,64], index: 3, kind: input, shape index: {}]   ;;  %s7810_s4 = inlined_call_operand.vmem [shape: f32[64,32], index: 4, kind: input, shape index: {}]   ;;  %s7811_s5 = inlined_call_operand.vmem [shape: f32[32,8], index: 5, kind: input, shape index: {}]   ;;  %s7812_s6 = inlined_call_operand.vmem [shape: f32[8,64], index: 6, kind: input, shape index: {}]   ;;  %s7813_s7 = inlined_call_operand.vmem [shape: f32[8,64], index: 7, kind: input, shape index: {}]   ;;  %s7814_s8 = inlined_call_operand.vmem [shape: f32[64,32], index: 8, kind: input, shape index: {}]   ;;  %s7815_s9 = inlined_call_operand.vmem [shape: f32[32,1], index: 9, kind: input, shape index: {}]   ;;  %s7816_s10 = inlined_call_operand.vmem [shape: f32[16,128], index: 10, kind: input, shape index: {}]   ;;  %s7817_s11 = inlined_call_operand.hbm [shape: f32[8,128], index: 11, kind: output, shape index: {}]  }
   0x1   :  { %v54_v0 = vld [vmem:[%s7808_s2] sm:$0xff]  ;;  %v55_v1 = vld [vmem:[%s7808_s2 + $0x8] sm:$0xff]  ;;  %v56_v2 = vld [vmem:[%s7808_s2 + $0x10] sm:$0xff] }
   0x2   :  { %v82_v3 = vand.u32 4294901760, %v54_v0  ;;  %v85_v4 = vand.u32 4294901760, %v55_v1  ;;  %v57_v5 = vld [vmem:[%s7808_s2 + $0x18] sm:$0xff]  ;;  %v88_v6 = vand.u32 4294901760, %v56_v2  ;;  %v58_v7 = vld [vmem:[%s7808_s2 + $0x20] sm:$0xff]  ;;  %v59_v8 = vld [vmem:[%s7808_s2 + $0x28] sm:$0xff] }
   0x3   :  { %v91_v9 = vand.u32 4294901760, %v57_v5  ;;  %v94_v10 = vand.u32 4294901760, %v58_v7  ;;  %v97_v11 = vand.u32 4294901760, %v59_v8  ;;  %v60_v16 = vld [vmem:[%s7808_s2 + $0x30] sm:$0xff]  ;;  %v61_v17 = vld [vmem:[%s7808_s2 + $0x38] sm:$0xff] }
   0x4   :  { %v6751_v12 = vpack.c.bf16 %v85_v4, %v82_v3  ;;  %v6753_v13 = vsub.f32 %v54_v0, %v82_v3  ;;  %v6755_v14 = vsub.f32 %v55_v1, %v85_v4  ;;  %v6757_v15 = vsub.f32 %v56_v2, %v88_v6 }
   0x5   :  { %v6765_v18 = vpack.c.bf16 %v91_v9, %v88_v6  ;;  %v6767_v19 = vsub.f32 %v57_v5, %v91_v9  ;;  %v6769_v20 = vsub.f32 %v58_v7, %v94_v10 }
   0x6   :  { %16 = vsyncpa [#allocation3], 0  ;;  %v181_v21 = vand.u32 4294901760, %v6753_v13  ;;  %v188_v22 = vand.u32 4294901760, %v6755_v14  ;;  %v195_v23 = vand.u32 4294901760, %v6757_v15  ;;  %v6774_v24 = vsub.f32 %v59_v8, %v97_v11  ;;  %5968 = vmatprep.subr.bf16.mxu1 %v6751_v12  ;;  %v62_v37 = vld [vmem:[%s7808_s2 + $0x40] sm:$0xff] }
   0x7   :  { %v202_v25 = vand.u32 4294901760, %v6767_v19  ;;  %v209_v26 = vand.u32 4294901760, %v6769_v20  ;;  %v100_v27 = vand.u32 4294901760, %v60_v16  ;;  %v103_v28 = vand.u32 4294901760, %v61_v17  ;;  %5970 = vmatpush3.bf16.msra.mxu1 %v6751_v12  ;;  %v63_v38 = vld [vmem:[%s7808_s2 + $0x48] sm:$0xff]  ;;  %v64_v52 = vld [vmem:[%s7808_s2 + $0x50] sm:$0xff] }
   0x8   :  { %v182_v29 = vsub.f32 %v6753_v13, %v181_v21  ;;  %v189_v30 = vsub.f32 %v6755_v14, %v188_v22  ;;  %v196_v31 = vsub.f32 %v6757_v15, %v195_v23  ;;  %v216_v32 = vand.u32 4294901760, %v6774_v24  ;;  %5972 = vmatprep.subr.bf16.mxu1 %v6765_v18  ;;  %v65_v43 = vld [vmem:[%s7808_s2 + $0x58] sm:$0x3]  ;;  %v52_v57 = vld [vmem:[%s7806_s0] sm:$0xff]  ;;  %s6671_s13 = smov 16  }
   0x9   :  { %v203_v33 = vsub.f32 %v6767_v19, %v202_v25  ;;  %v6794_v34 = vpack.c.bf16 %v97_v11, %v94_v10  ;;  %v210_v35 = vsub.f32 %v6769_v20, %v209_v26  ;;  %v6799_v36 = vsub.f32 %v60_v16, %v100_v27  ;;  %v53_v1 = vld [vmem:[%s7807_s1] sm:$0xff] }
   0xa   :  { %v183_v39 = vand.u32 4294901760, %v182_v29  ;;  %v190_v40 = vand.u32 4294901760, %v189_v30  ;;  %v197_v41 = vand.u32 4294901760, %v196_v31  ;;  %v217_v42 = vsub.f32 %v6774_v24, %v216_v32 }
   0xb   :  { %v204_v44 = vand.u32 4294901760, %v203_v33  ;;  %v211_v45 = vand.u32 4294901760, %v210_v35  ;;  %v223_v46 = vand.u32 4294901760, %v6799_v36  ;;  %v6814_v47 = vsub.f32 %v61_v17, %v103_v28  ;;  %5974 = vmatpush3.bf16.msra.mxu1 %v6765_v18 }
   0xc   :  { %v5991_v48 = vpack.c.bf16 %v190_v40, %v183_v39  ;;  %v218_v49 = vand.u32 4294901760, %v217_v42  ;;  %v106_v50 = vand.u32 4294901760, %v62_v37  ;;  %v109_v51 = vand.u32 4294901760, %v63_v38  ;;  %5976 = vmatprep.subr.bf16.mxu1 %v6794_v34 }
   0xd   :  { %v5995_v53 = vpack.c.bf16 %v204_v44, %v197_v41  ;;  %v224_v54 = vsub.f32 %v6799_v36, %v223_v46  ;;  %v230_v55 = vand.u32 4294901760, %v6814_v47  ;;  %v79_v56 = vsel %vm77_vm0, %v65_v43, 0 }
   0xe   :  { %5992 = vmatprep.subr.bf16.mxu0 %v5991_v48  ;;  %v6829_v58 = vpack.c.bf16 %v103_v28, %v100_v27  ;;  %v6831_v59 = vsub.f32 %v62_v37, %v106_v50  ;;  %v6833_v60 = vsub.f32 %v63_v38, %v109_v51  ;;  %v5999_v61 = vpack.c.bf16 %v218_v49, %v211_v45 }
   0xf   :  { %5994 = vmatpush3.bf16.msra.mxu0 %v5991_v48  ;;  %v231_v62 = vsub.f32 %v6814_v47, %v230_v55  ;;  %v112_v63 = vand.u32 4294901760, %v64_v52  ;;  %v115_v0 = vand.u32 4294901760, %v79_v56  ;;  %5978 = vmatpush3.bf16.msra.mxu1 %v6794_v34  ;;  %v225_v2 = vand.u32 4294901760, %v224_v54 }
  0x10   :  { %5996 = vmatprep.subr.bf16.mxu0 %v5995_v53  ;;  %v237_v3 = vand.u32 4294901760, %v6831_v59  ;;  %v244_v4 = vand.u32 4294901760, %v6833_v60  ;;  %v72_v5 = vsel %vm70_vm1, %v52_v57, 0  ;;  %5980 = vmatprep.subr.bf16.mxu1 %v6829_v58  ;;  %v75_v16 = vsel %vm70_vm1, %v53_v1, 0  ;;  %v800_v1 = vld [vmem:[%s7809_s3 + $0x38] sm:$0xff] }
  0x11   :  { %v232_v6 = vand.u32 4294901760, %v231_v62  ;;  %v6844_v7 = vsub.f32 %v64_v52, %v112_v63  ;;  %v6846_v8 = vsub.f32 %v79_v56, %v115_v0  ;;  %v6850_v11 = vand.u32 4294901760, %v72_v5 }
  0x12   :  { %v238_v9 = vsub.f32 %v6831_v59, %v237_v3  ;;  %v245_v10 = vsub.f32 %v6833_v60, %v244_v4  ;;  %v6853_v17 = vpack.c.bf16 %v109_v51, %v106_v50  ;;  %v6859_v33 = vand.u32 4294901760, %v75_v16 }
  0x13   :  { %5998 = vmatpush3.bf16.msra.mxu0 %v5995_v53  ;;  %v251_v27 = vand.u32 4294901760, %v6844_v7  ;;  %v258_v28 = vand.u32 4294901760, %v6846_v8  ;;  %5982 = vmatpush3.bf16.msra.mxu1 %v6829_v58  ;;  %v6003_v29 = vpack.c.bf16 %v232_v6, %v225_v2  ;;  %v6864_v39 = vpack.c.bf16 %v115_v0, %v112_v63  ;;  %v799_v0 = vld [vmem:[%s7809_s3 + $0x30] sm:$0xff]  ;;  %v6981_v6 = vld [vmem:[%s7809_s3 + $0x48] sm:$0xff] }
  0x14   :  { %6000 = vmatprep.subr.bf16.mxu0 %v5999_v61  ;;  %v239_v30 = vand.u32 4294901760, %v238_v9  ;;  %v246_v31 = vand.u32 4294901760, %v245_v10  ;;  %5226 = vmatprep.mubr.f32.mxu0 %v6850_v11  ;;  %v159_v40 = vsub.f32 %v72_v5, %v6850_v11  ;;  %v6868_v41 = vsub.f32 %v75_v16, %v6859_v33  ;;  %v6976_v5 = vld [vmem:[%s7809_s3 + $0x40] sm:$0xff]  ;;  %v6992_v10 = vld [vmem:[%s7809_s3 + $0x50] sm:$0xff] }
  0x15   :  { %v252_v35 = vsub.f32 %v6844_v7, %v251_v27  ;;  %v259_v37 = vsub.f32 %v6846_v8, %v258_v28  ;;  %5984 = vmatprep.subr.bf16.mxu1 %v6853_v17  ;;  %v6063_v44 = vpack.c.bf16 %v188_v22, %v181_v21  ;;  %v6067_v45 = vpack.c.bf16 %v202_v25, %v195_v23 }
  0x16   :  { %v6007_v38 = vpack.c.bf16 %v246_v31, %v239_v30  ;;  %v160_v48 = vand.u32 4294901760, %v159_v40  ;;  %v170_v49 = vand.u32 4294901760, %v6868_v41  ;;  %v6071_v50 = vpack.c.bf16 %v216_v32, %v209_v26 }
  0x17   :  { %6002 = vmatpush3.bf16.msra.mxu0 %v5999_v61  ;;  %v253_v42 = vand.u32 4294901760, %v252_v35  ;;  %v260_v43 = vand.u32 4294901760, %v259_v37  ;;  %5986 = vmatpush3.bf16.msra.mxu1 %v6853_v17  ;;  %v6075_v51 = vpack.c.bf16 %v230_v55, %v223_v46  ;;  %v6079_v21 = vpack.c.bf16 %v244_v4, %v237_v3  ;;  %v7031_v35 = vld [vmem:[%s7809_s3 + $0x78] sm:$0xff] }
  0x18   :  { %6004 = vmatprep.subr.bf16.mxu0 %v6003_v29  ;;  %5988 = vmatprep.subr.bf16.mxu1 %v6864_v39  ;;  %v6083_v22 = vpack.c.bf16 %v258_v28, %v251_v27  ;;  %v161_v52 = vsub.f32 %v159_v40, %v160_v48  ;;  %v171_v23 = vsub.f32 %v6868_v41, %v170_v49  ;;  %v832_v2 = vand.u32 4294901760, %v799_v0  ;;  %v7012_v28 = vld [vmem:[%s7809_s3 + $0x60] sm:$0xff] }
  0x19   :  { %v6011_v25 = vpack.c.bf16 %v260_v43, %v253_v42  ;;  %v6015_v26 = vpack.c.bf16 %v6755_v14, %v6753_v13  ;;  %v6019_v32 = vpack.c.bf16 %v6767_v19, %v6757_v15  ;;  %v6023_v46 = vpack.c.bf16 %v6774_v24, %v6769_v20  ;;  %v794_v19 = vld [vmem:[%s7809_s3 + $0x8] sm:$0xff] }
  0x1a   :  { %v162_v53 = vand.u32 4294901760, %v161_v52  ;;  %v172_v54 = vand.u32 4294901760, %v171_v23  ;;  %v6027_v55 = vpack.c.bf16 %v6814_v47, %v6799_v36  ;;  %v6031_v13 = vpack.c.bf16 %v6833_v60, %v6831_v59  ;;  %v795_v36 = vld [vmem:[%s7809_s3 + $0x10] sm:$0xff]  ;;  %v796_v47 = vld [vmem:[%s7809_s3 + $0x18] sm:$0xff]  ;;  %v797_v59 = vld [vmem:[%s7809_s3 + $0x20] sm:$0xff] }
  0x1b   :  { %6006 = vmatpush3.bf16.msra.mxu0 %v6003_v29  ;;  %5990 = vmatpush3.bf16.msra.mxu1 %v6864_v39  ;;  %v6035_v14 = vpack.c.bf16 %v6846_v8, %v6844_v7  ;;  %v817_v24 = vand.u32 4294901760, %v794_v19  ;;  %v820_v56 = vand.u32 4294901760, %v795_v36  ;;  %v823_v57 = vand.u32 4294901760, %v796_v47  ;;  %v798_v60 = vld [vmem:[%s7809_s3 + $0x28] sm:$0xff] }
  0x1c   :  { %6008 = vmatprep.subr.bf16.mxu0 %v6007_v38  ;;  %5199 = vmatprep.mubr.f32.mxu1 %v162_v53  ;;  %v826_v61 = vand.u32 4294901760, %v797_v59  ;;  %v829_v62 = vand.u32 4294901760, %v798_v60  ;;  %v835_v3 = vand.u32 4294901760, %v800_v1  ;;  %v838_v7 = vand.u32 4294901760, %v6976_v5  ;;  %v7017_v29 = vld [vmem:[%s7809_s3 + $0x68] sm:$0xff] }
  0x1d   :  { %v841_v8 = vand.u32 4294901760, %v6981_v6  ;;  %v844_v16 = vand.u32 4294901760, %v6992_v10  ;;  %v850_v30 = vand.u32 4294901760, %v7012_v28  ;;  %v853_v31 = vand.u32 4294901760, %v7017_v29 }
  0x1e   :  { %5200 = vmatmul.mubr.f32.vlgmr.msra.gmra.mrb[0].mxu1 %v172_v54  ;;  %v6961_v63 = vpack.c.bf16 %v829_v62, %v826_v61  ;;  %v6971_v4 = vpack.c.bf16 %v835_v3, %v832_v2  ;;  %v7077_v54 = vsub.f32 %v797_v59, %v826_v61  ;;  %v7105_v61 = vsub.f32 %v6976_v5, %v838_v7 }
  0x1f   :  { %6010 = vmatpush3.bf16.msra.mxu0 %v6007_v38  ;;  %v6987_v9 = vpack.c.bf16 %v841_v8, %v838_v7  ;;  %v7037_v37 = vpack.c.bf16 %v853_v31, %v850_v30  ;;  %vm1501_vm2 = vcmask 523264   ;;  %vm2174_vm3 = vcmask 261120  }
  0x20   :  { %6012 = vmatprep.subr.bf16.mxu0 %v6011_v25  ;;  %vm6668_vm4 = vmmov 0   ;;  %vm2789_vm5 = vcmask 64512   ;;  %vm4750_vm6 = vcmask 130112   ;;  %vm4756_vm7 = vcmask 138368  }
  0x23   :  { %6014 = vmatpush3.bf16.msra.mxu0 %v6011_v25 }
  0x24   :  { %6016 = vmatprep.subr.bf16.mxu0 %v6015_v26 }
  0x26   :  { %5227 = vmatmul.mubr.f32.vlgmr.msra.gmra.mrb[0].mxu0 %v6859_v33 }
  0x27   :  { %6018 = vmatpush3.bf16.msra.mxu0 %v6015_v26  ;;  %5253 = vmatprep.mubr.f32.mxu0 %v159_v40  ;;  %v7079_v26 = vsub.f32 %v798_v60, %v829_v62  ;;  %v7108_v62 = vsub.f32 %v6981_v6, %v841_v8  ;;  %v7125_v6 = vsub.f32 %v6992_v10, %v844_v16 }
  0x28   :  { %6020 = vmatprep.subr.bf16.mxu0 %v6019_v32  ;;  %v7142_v10 = vsub.f32 %v7012_v28, %v850_v30 }
  0x2b   :  { %6022 = vmatpush3.bf16.msra.mxu0 %v6019_v32 }
  0x2c   :  { %6024 = vmatprep.subr.bf16.mxu0 %v6023_v46 }
  0x2f   :  { %6026 = vmatpush3.bf16.msra.mxu0 %v6023_v46 }
  0x30   :  { %6028 = vmatprep.subr.bf16.mxu0 %v6027_v55 }
  0x33   :  { %6030 = vmatpush3.bf16.msra.mxu0 %v6027_v55  ;;  %v7829_v55 = vand.u32 4294901760, %v7077_v54 }
  0x34   :  { %6032 = vmatprep.subr.bf16.mxu0 %v6031_v13 }
  0x37   :  { %6034 = vmatpush3.bf16.msra.mxu0 %v6031_v13  ;;  %v7828_v13 = vand.u32 4294901760, %v7079_v26 }
  0x38   :  { %6036 = vmatprep.subr.bf16.mxu0 %v6035_v14 }
  0x3b   :  { %6038 = vmatpush3.bf16.msra.mxu0 %v6035_v14 }
  0x3c   :  { %6040 = vmatprep.subr.bf16.mxu0 %v6751_v12 }
  0x3e   :  { %5254 = vmatmul.mubr.f32.vlgmr.msra.gmra.mrb[0].mxu0 %v6868_v41  ;;  %v7043_v41 = vsub.f32 %v794_v19, %v817_v24  ;;  %v7089_v19 = vsub.f32 %v799_v0, %v832_v2 }
  0x3f   :  { %6042 = vmatpush3.bf16.msra.mxu0 %v6751_v12  ;;  %5280 = vmatprep.mubr.f32.mxu0 %v160_v48 }
  0x40   :  { %6044 = vmatprep.subr.bf16.mxu0 %v6765_v18 }
  0x43   :  { %6046 = vmatpush3.bf16.msra.mxu0 %v6765_v18 }
  0x44   :  { %6048 = vmatprep.subr.bf16.mxu0 %v6794_v34 }
  0x47   :  { %6050 = vmatpush3.bf16.msra.mxu0 %v6794_v34 }
  0x48   :  { %6052 = vmatprep.subr.bf16.mxu0 %v6829_v58 }
  0x4b   :  { %6054 = vmatpush3.bf16.msra.mxu0 %v6829_v58 }
  0x4c   :  { %6056 = vmatprep.subr.bf16.mxu0 %v6853_v17 }
  0x4f   :  { %6058 = vmatpush3.bf16.msra.mxu0 %v6853_v17 }
  0x50   :  { %6060 = vmatprep.subr.bf16.mxu0 %v6864_v39 }
  0x53   :  { %6062 = vmatpush3.bf16.msra.mxu0 %v6864_v39 }
  0x54   :  { %6064 = vmatprep.subr.bf16.mxu0 %v6063_v44 }
  0x56   :  { %5281 = vmatmul.mubr.f32.vlgmr.msra.gmra.mrb[0].mxu0 %v170_v49  ;;  %v7062_v49 = vsub.f32 %v795_v36, %v820_v56 }
  0x57   :  { %6066 = vmatpush3.bf16.msra.mxu0 %v6063_v44  ;;  %5307 = vmatprep.mubr.f32.mxu0 %v6850_v11  ;;  %v7832_v44 = vand.u32 4294901760, %v7043_v41 }
  0x58   :  { %6068 = vmatprep.subr.bf16.mxu0 %v6067_v45 }
  0x59   :  { %v925_v48 = vsub.f32 %v7043_v41, %v7832_v44 }
  0x5b   :  { %6070 = vmatpush3.bf16.msra.mxu0 %v6067_v45 }
  0x5c   :  { %6072 = vmatprep.subr.bf16.mxu0 %v6071_v50 }
  0x5f   :  { %6074 = vmatpush3.bf16.msra.mxu0 %v6071_v50  ;;  %v7064_v50 = vsub.f32 %v796_v47, %v823_v57  ;;  %v7827_v47 = vand.u32 4294901760, %v7089_v19 }
  0x60   :  { %6076 = vmatprep.subr.bf16.mxu0 %v6075_v51 }
  0x61   :  { %v7830_v52 = vand.u32 4294901760, %v7064_v50  ;;  %v960_v59 = vsub.f32 %v7089_v19, %v7827_v47 }
  0x63   :  { %6078 = vmatpush3.bf16.msra.mxu0 %v6075_v51  ;;  %v939_v53 = vsub.f32 %v7064_v50, %v7830_v52 }
  0x64   :  { %6080 = vmatprep.subr.bf16.mxu0 %v6079_v21 }
  0x65   :  { %v940_v46 = vand.u32 4294901760, %v939_v53 }
  0x67   :  { %6082 = vmatpush3.bf16.msra.mxu0 %v6079_v21  ;;  %v926_v21 = vand.u32 4294901760, %v925_v48 }
  0x68   :  { %6084 = vmatprep.subr.bf16.mxu0 %v6083_v22 }
  0x6b   :  { %6086 = vmatpush3.bf16.msra.mxu0 %v6083_v22  ;;  %v7831_v22 = vand.u32 4294901760, %v7062_v49 }
  0x6c   :  { %6088 = vmatprep.subr.bf16.mxu0 %v6751_v12 }
  0x6d   :  { %v932_v25 = vsub.f32 %v7062_v49, %v7831_v22 }
  0x6e   :  { %5308 = vmatmul.mubr.f32.vlgmr.msra.gmra.mrb[0].mxu0 %v6859_v33 }
  0x6f   :  { %6090 = vmatpush3.bf16.msra.mxu0 %v6751_v12  ;;  %5334 = vmatprep.mubr.f32.mxu0 %v6850_v11  ;;  %v6997_v11 = vld [vmem:[%s7809_s3 + $0x58] sm:$0xff]  ;;  %v933_v32 = vand.u32 4294901760, %v932_v25  ;;  %v7823_v25 = vand.u32 4294901760, %v7125_v6 }
  0x70   :  { %6092 = vmatprep.subr.bf16.mxu0 %v6765_v18 }
  0x71   :  { %v7084_v14 = vpack.c.bf16 %v940_v46, %v933_v32  ;;  %v988_v46 = vsub.f32 %v7125_v6, %v7823_v25 }
  0x73   :  { %6094 = vmatpush3.bf16.msra.mxu0 %v6765_v18  ;;  %v793_v18 = vld [vmem:[%s7809_s3] sm:$0xff] }
  0x74   :  { %6096 = vmatprep.subr.bf16.mxu0 %v6794_v34  ;;  %v814_v20 = vand.u32 4294901760, %v793_v18 }
  0x76   :  { %v7041_v40 = vsub.f32 %v793_v18, %v814_v20  ;;  %v946_v18 = vsub.f32 %v7077_v54, %v7829_v55 }
  0x77   :  { %6098 = vmatpush3.bf16.msra.mxu0 %v6794_v34  ;;  %v6941_v34 = vpack.c.bf16 %v817_v24, %v814_v20  ;;  %v7091_v20 = vsub.f32 %v800_v1, %v835_v3  ;;  %v953_v24 = vsub.f32 %v7079_v26, %v7828_v13  ;;  %v961_v1 = vand.u32 4294901760, %v960_v59 }
  0x78   :  { %6100 = vmatprep.subr.bf16.mxu0 %v6829_v58  ;;  %v7833_v43 = vand.u32 4294901760, %v7041_v40  ;;  %v947_v36 = vand.u32 4294901760, %v946_v18  ;;  %v7825_v3 = vand.u32 4294901760, %v7105_v61  ;;  %v7821_v18 = vand.u32 4294901760, %v7142_v10 }
  0x79   :  { %6112 = vmatprep.subr.bf16.mxu1 %v6941_v34 }
  0x7a   :  { %6114 = vmatpush3.bf16.msra.mxu1 %v6941_v34  ;;  %v918_v45 = vsub.f32 %v7041_v40, %v7833_v43  ;;  %v1002_v28 = vsub.f32 %v7142_v10, %v7821_v18 }
  0x7b   :  { %6102 = vmatpush3.bf16.msra.mxu0 %v6829_v58  ;;  %v6951_v58 = vpack.c.bf16 %v823_v57, %v820_v56  ;;  %v7826_v56 = vand.u32 4294901760, %v7091_v20  ;;  %v954_v57 = vand.u32 4294901760, %v953_v24 }
  0x7c   :  { %6104 = vmatprep.subr.bf16.mxu0 %v6853_v17  ;;  %v919_v51 = vand.u32 4294901760, %v918_v45  ;;  %v7824_v45 = vand.u32 4294901760, %v7108_v62  ;;  %v1003_v59 = vand.u32 4294901760, %v1002_v28 }
  0x7d   :  { %6116 = vmatprep.subr.bf16.mxu1 %v6951_v58  ;;  %v967_v60 = vsub.f32 %v7091_v20, %v7826_v56  ;;  %v7110_v0 = vpack.c.bf16 %v954_v57, %v947_v36 }
  0x7e   :  { %6118 = vmatpush3.bf16.msra.mxu1 %v6951_v58  ;;  %v7069_v23 = vpack.c.bf16 %v926_v21, %v919_v51  ;;  %v974_v51 = vsub.f32 %v7105_v61, %v7825_v3  ;;  %v981_v5 = vsub.f32 %v7108_v62, %v7824_v45 }
  0x7f   :  { %6106 = vmatpush3.bf16.msra.mxu0 %v6853_v17  ;;  %6120 = vmatprep.subr.bf16.mxu1 %v6961_v63  ;;  %v847_v17 = vand.u32 4294901760, %v6997_v11  ;;  %v968_v2 = vand.u32 4294901760, %v967_v60 }
  0x80   :  { %6108 = vmatprep.subr.bf16.mxu0 %v6864_v39  ;;  %v975_v8 = vand.u32 4294901760, %v974_v51  ;;  %v982_v21 = vand.u32 4294901760, %v981_v5 }
  0x81   :  { %v7007_v27 = vpack.c.bf16 %v847_v17, %v844_v16  ;;  %v7114_v48 = vpack.c.bf16 %v968_v2, %v961_v1  ;;  %v7130_v7 = vsub.f32 %v6997_v11, %v847_v17  ;;  %v7147_v11 = vsub.f32 %v7017_v29, %v853_v31 }
  0x82   :  { %6122 = vmatpush3.bf16.msra.mxu1 %v6961_v63  ;;  %v7134_v32 = vpack.c.bf16 %v982_v21, %v975_v8  ;;  %v989_v17 = vand.u32 4294901760, %v988_v46  ;;  %v7186_v8 = vpack.c.bf16 %v7043_v41, %v7041_v40  ;;  %v7190_v21 = vpack.c.bf16 %v7064_v50, %v7062_v49 }
  0x83   :  { %6110 = vmatpush3.bf16.msra.mxu0 %v6864_v39  ;;  %6124 = vmatprep.subr.bf16.mxu1 %v6971_v4  ;;  %v859_v39 = vand.u32 4294901760, %v7031_v35  ;;  %v7822_v53 = vand.u32 4294901760, %v7130_v7  ;;  %v7820_v24 = vand.u32 4294901760, %v7147_v11  ;;  %v7194_v46 = vpack.c.bf16 %v7079_v26, %v7077_v54 }
  0x84   :  { %v7209_v28 = vpack.c.bf16 %v7130_v7, %v7125_v6 }
  0x85   :  { %v995_v16 = vsub.f32 %v7130_v7, %v7822_v53  ;;  %v1009_v30 = vsub.f32 %v7147_v11, %v7820_v24  ;;  %v7168_v31 = vsub.f32 %v7031_v35, %v859_v39 }
  0x86   :  { %5335 = vmatmul.mubr.f32.vlgmr.msra.gmra.mrb[0].mxu0 %v6859_v33  ;;  %6126 = vmatpush3.bf16.msra.mxu1 %v6971_v4  ;;  %v7026_v33 = vld [vmem:[%s7809_s3 + $0x70] sm:$0xff]  ;;  %s6672_s3 = smov [#allocation2]  }
  0x87   :  { %6128 = vmatprep.subr.bf16.mxu1 %v6987_v9  ;;  %v856_v38 = vand.u32 4294901760, %v7026_v33  ;;  %v996_v36 = vand.u32 4294901760, %v995_v16  ;;  %7837 = vst [vmem:[#allocation6_spill] sm:$0xff] %v7168_v31  ;;  %v1010_v60 = vand.u32 4294901760, %v1009_v30  ;;  %v7818_v2 = vand.u32 4294901760, %v7168_v31  ;;  %s4764_s14 = sshll.u32 %s6672_s3, 4  ;;  %s4765_s14 = int_to_ptr.vmem [resolvable:$true] %s4764_s14 }
  0x88   :  { %v7198_v16 = vpack.c.bf16 %v7091_v20, %v7089_v19  ;;  %s6643_s15 = scalar_lea.vmem %s4765_s14, 128  ;;  %p6648_p1 = scmp.lt.s32.totalorder %s4765_s14, %s4765_s14 }
  0x89   :  { %v7050_v42 = vpack.c.bf16 %v859_v39, %v856_v38  ;;  %v7163_v29 = vsub.f32 %v7026_v33, %v856_v38  ;;  %v7170_v57 = vpack.c.bf16 %v996_v36, %v989_v17  ;;  %v7174_v51 = vpack.c.bf16 %v1010_v60, %v1003_v59  ;;  %v4772_v36 = vld [vmem:[%s7816_s10] ss:$0 sm:$0xff]  ;;  %p6644_p0 = scmp.ne.s32.totalorder %s4765_s14, %s6643_s15  ;;  %p6649_p2 = scmp.lt.s32.totalorder %s6643_s15, %s6643_s15 }
  0x8a   :  { %6130 = vmatpush3.bf16.msra.mxu1 %v6987_v9  ;;  %v1023_v38 = vsub.f32 %v7168_v31, %v7818_v2  ;;  %v7202_v17 = vpack.c.bf16 %v7108_v62, %v7105_v61  ;;  %v7215_v60 = vpack.c.bf16 %v7147_v11, %v7142_v10 }
  0x8b   :  { %6132 = vmatprep.subr.bf16.mxu1 %v7007_v27  ;;  %7836 = vst [vmem:[#allocation5_spill] sm:$0xff] %v7163_v29  ;;  %v7819_v1 = vand.u32 4294901760, %v7163_v29  ;;  %p6650_p3 = por %p6649_p2, %p6648_p1 }
  0x8c   :  { %v1024_v39 = vand.u32 4294901760, %v1023_v38 }
  0x8d   :  { %v1016_v33 = vsub.f32 %v7163_v29, %v7819_v1  ;;  %v7219_v1 = vpack.c.bf16 %v7168_v31, %v7163_v29  ;;  %p6651_p4 = pnand %p6650_p3, %p6644_p0 }
  0x8e   :  { %6134 = vmatpush3.bf16.msra.mxu1 %v7007_v27 }
  0x8f   :  { %6136 = vmatprep.subr.bf16.mxu1 %v7037_v37  ;;  %v1017_v35 = vand.u32 4294901760, %v1016_v33 }
  0x91   :  { %v7182_v5 = vpack.c.bf16 %v1024_v39, %v1017_v35 }
  0x92   :  { %6138 = vmatpush3.bf16.msra.mxu1 %v7037_v37 }
  0x93   :  { %6140 = vmatprep.subr.bf16.mxu1 %v7050_v42 }
  0x96   :  { %6142 = vmatpush3.bf16.msra.mxu1 %v7050_v42 }
  0x97   :  { %6144 = vmatprep.subr.bf16.mxu1 %v7069_v23 }
  0xf1   :  { %v6931_v12 = vpop.f32.mrb[0].mxu1 }
  0xf2   :  { %v6933_v15 = vpop.f32.mrb[1].mxu1  ;;  %v175_v30 = vadd.f32 %v6931_v12, %v4772_v36 }
  0xf3   :  { %v165_v59 = vadd.f32 %v4772_v36, %v6933_v15 }
 0x159   :  { %v5336_v33 = vpop.f32.mrb[0].mxu0 }
 0x15a   :  { %v6556_v38 = vadd.f32 %v5336_v33, %v175_v30  ;;  %v703_v35 = vpop.f32.mrb[1].mxu0 }
 0x15b   :  { %v6558_v39 = vadd.f32 %v703_v35, %v165_v59 }
 0x15c   :  { %v714_v2 = vmul.f32 0.01, %v6556_v38 }
 0x15d   :  { %v713_v24 = vmul.f32 0.01, %v6558_v39 }
 0x15e   :  { %v716_v18 = vmax.f32 %v6556_v38, %v714_v2 }
 0x15f   :  { %v715_v53 = vmax.f32 %v6558_v39, %v713_v24 }
 0x160   :  { %v739_v25 = vrot.slane %v716_v18, 4 }
 0x161   :  { %v717_v12 = vrot.slane %v715_v53, 4 }
 0x162   :  { %v740_v45 = vadd.f32 %v739_v25, %v716_v18 }
 0x163   :  { %v718_v15 = vadd.f32 %v717_v12, %v715_v53 }
 0x164   :  { %v741_v36 = vrot.slane %v740_v45, 2 }
 0x165   :  { %v719_v3 = vrot.slane %v718_v15, 2 }
 0x166   :  { %v742_v56 = vadd.f32 %v741_v36, %v740_v45 }
 0x167   :  { %v720_v47 = vadd.f32 %v719_v3, %v718_v15 }
 0x168   :  { %v743_v13 = vrot.slane %v742_v56, 1 }
 0x169   :  { %v721_v30 = vrot.slane %v720_v47, 1 }
 0x16a   :  { %v744_v33 = vadd.f32 %v743_v13, %v742_v56 }
 0x16b   :  { %v722_v59 = vadd.f32 %v721_v30, %v720_v47 }
 0x16c   :  { %v745_v35 = vmul.f32 0.125, %v744_v33  ;;  %v769_v33 = vlaneseq }
 0x16d   :  { %v724_v55 = vmul.f32 0.125, %v722_v59 }
 0x16e   :  { %v746_v52 = vsub.f32 %v716_v18, %v745_v35 }
 0x16f   :  { %v725_v22 = vsub.f32 %v715_v53, %v724_v55 }
 0x170   :  { %v747_v44 = vmul.f32 %v746_v52, %v746_v52 }
 0x171   :  { %v726_v43 = vmul.f32 %v725_v22, %v725_v22  ;;  %v770_v22 = vshrl.u32 %v769_v33, 7 }
 0x172   :  { %v748_v2 = vrot.slane %v747_v44, 4 }
 0x173   :  { %v727_v24 = vrot.slane %v726_v43, 4 }
 0x174   :  { %v749_v38 = vadd.f32 %v748_v2, %v747_v44  ;;  %v7224_v44 = vsub.s32 0, %v770_v22 }
 0x175   :  { %v728_v39 = vadd.f32 %v727_v24, %v726_v43  ;;  %v40_v43 = vld [vmem:[%s7816_s10 + $0x1] sm:$0x1] }
 0x176   :  { %v750_v25 = vrot.slane %v749_v38, 2 }
 0x177   :  { %v729_v12 = vrot.slane %v728_v39, 2 }
 0x178   :  { %v751_v31 = vadd.f32 %v750_v25, %v749_v38 }
 0x179   :  { %v730_v29 = vadd.f32 %v729_v12, %v728_v39 }
 0x17a   :  { %v752_v45 = vrot.slane %v751_v31, 1 }
 0x17b   :  { %v731_v3 = vrot.slane %v730_v29, 1 }
 0x17c   :  { %v753_v15 = vadd.f32 %v752_v45, %v751_v31 }
 0x17d   :  { %v732_v36 = vadd.f32 %v731_v3, %v730_v29  ;;  %v41_v29 = vld [vmem:[%s7816_s10 + $0x2] sm:$0x1] }
 0x17e   :  { %v754_v13 = vmul.f32 0.125, %v753_v15 }
 0x17f   :  { %v733_v47 = vmul.f32 0.125, %v732_v36 }
 0x180   :  { %v755_v56 = vadd.f32 1e-05, %v754_v13 }
 0x181   :  { %v734_v30 = vadd.f32 1e-05, %v733_v47 }
 0x182   :  { %6631 = vrsqrt.f32 %v755_v56 }
 0x183   :  { %6633 = vrsqrt.f32 %v734_v30 }
 0x18c   :  { %v6632_v52 = vpop.eup %6631 }
 0x18d   :  { %v6634_v59 = vpop.eup %6633  ;;  %v757_v2 = vmul.f32 %v6632_v52, %v40_v43 }
 0x18e   :  { %v736_v31 = vmul.f32 %v6634_v59, %v40_v43 }
 0x18f   :  { %v758_v24 = vmul.f32 %v757_v2, %v745_v35  ;;  %v776_v38 = vrot.slane %v757_v2, %v7224_v44 }
 0x190   :  { %v737_v39 = vmul.f32 %v736_v31, %v724_v55  ;;  %v772_v25 = vrot.slane %v736_v31, %v7224_v44 }
 0x191   :  { %v759_v12 = vsub.f32 %v41_v29, %v758_v24  ;;  %v790_v15 = vmul.f32 %v776_v38, %v716_v18 }
 0x192   :  { %v738_v45 = vsub.f32 %v41_v29, %v737_v39  ;;  %v789_v36 = vmul.f32 %v772_v25, %v715_v53  ;;  %v1578_v39 = vld [vmem:[%s7810_s4 + $0x30] sm:$0xff]  ;;  %v1579_v25 = vld [vmem:[%s7810_s4 + $0x38] sm:$0xff] }
 0x193   :  { %v786_v3 = vrot.slane %v759_v12, %v7224_v44  ;;  %v1609_v12 = vand.u32 4294901760, %v1578_v39 }
 0x194   :  { %v782_v13 = vrot.slane %v738_v45, %v7224_v44  ;;  %v1612_v45 = vand.u32 4294901760, %v1579_v25 }
 0x195   :  { %v792_v47 = vadd.f32 %v790_v15, %v786_v3 }
 0x196   :  { %v791_v56 = vadd.f32 %v789_v36, %v782_v13  ;;  %v7385_v36 = vpack.c.bf16 %v1612_v45, %v1609_v12 }
 0x197   :  { %v7233_v30 = vand.u32 4294901760, %v792_v47 }
 0x198   :  { %v7235_v33 = vand.u32 4294901760, %v791_v56 }
 0x199   :  { %v7238_v35 = vsub.f32 %v792_v47, %v7233_v30 }
 0x19a   :  { %v895_v55 = vsub.f32 %v791_v56, %v7235_v33 }
 0x19b   :  { %v906_v22 = vand.u32 4294901760, %v7238_v35 }
 0x19c   :  { %v896_v43 = vand.u32 4294901760, %v895_v55 }
 0x19d   :  { %v907_v53 = vsub.f32 %v7238_v35, %v906_v22 }
 0x19e   :  { %v897_v18 = vsub.f32 %v895_v55, %v896_v43 }
 0x19f   :  { %v908_v59 = vand.u32 4294901760, %v907_v53 }
 0x1a0   :  { %v898_v52 = vand.u32 4294901760, %v897_v18 }
 0x1a2   :  { %5369 = vmatprep.mubr.f32.mxu1 %v898_v52 }
 0x1a3   :  { %5370 = vmatmul.mubr.f32.vlgmr.msra.gmra.mrb[2].mxu1 %v908_v59 }
 0x1a4   :  { %6146 = vmatpush3.bf16.msra.mxu1 %v7069_v23  ;;  %5404 = vmatprep.mubr.f32.mxu1 %v7235_v33  ;;  %v7838_v23 = vand.u32 4294901760, %v7041_v40  ;;  %v7842_v40 = vand.u32 4294901760, %v7077_v54  ;;  %v7848_v54 = vand.u32 4294901760, %v7125_v6 }
 0x1a5   :  { %6148 = vmatprep.subr.bf16.mxu1 %v7084_v14 }
 0x1a8   :  { %6150 = vmatpush3.bf16.msra.mxu1 %v7084_v14  ;;  %v7839_v14 = vand.u32 4294901760, %v7043_v41  ;;  %v7843_v41 = vand.u32 4294901760, %v7079_v26  ;;  %v7849_v26 = vand.u32 4294901760, %v7130_v7 }
 0x1a9   :  { %6152 = vmatprep.subr.bf16.mxu1 %v7110_v0 }
 0x1ac   :  { %6154 = vmatpush3.bf16.msra.mxu1 %v7110_v0  ;;  %v6239_v0 = vpack.c.bf16 %v7839_v14, %v7838_v23 }
 0x1ad   :  { %6156 = vmatprep.subr.bf16.mxu1 %v7114_v48 }
 0x1b0   :  { %6158 = vmatpush3.bf16.msra.mxu1 %v7114_v48  ;;  %v7840_v48 = vand.u32 4294901760, %v7062_v49  ;;  %v7845_v49 = vand.u32 4294901760, %v7091_v20  ;;  %v7851_v20 = vand.u32 4294901760, %v7147_v11  ;;  %v1577_v11 = vld [vmem:[%s7810_s4 + $0x28] sm:$0xff] }
 0x1b1   :  { %6160 = vmatprep.subr.bf16.mxu1 %v7134_v32  ;;  %v1606_v29 = vand.u32 4294901760, %v1577_v11 }
 0x1b3   :  { %v1720_v59 = vsub.f32 %v1577_v11, %v1606_v29 }
 0x1b4   :  { %6162 = vmatpush3.bf16.msra.mxu1 %v7134_v32  ;;  %v7841_v32 = vand.u32 4294901760, %v7064_v50 }
 0x1b5   :  { %6164 = vmatprep.subr.bf16.mxu1 %v7170_v57 }
 0x1b8   :  { %6166 = vmatpush3.bf16.msra.mxu1 %v7170_v57  ;;  %v6243_v57 = vpack.c.bf16 %v7841_v32, %v7840_v48  ;;  %v1721_v48 = vand.u32 4294901760, %v1720_v59 }
 0x1b9   :  { %6168 = vmatprep.subr.bf16.mxu1 %v7174_v51 }
 0x1bc   :  { %6170 = vmatpush3.bf16.msra.mxu1 %v7174_v51  ;;  %v7844_v51 = vand.u32 4294901760, %v7089_v19  ;;  %v7850_v19 = vand.u32 4294901760, %v7142_v10  ;;  %v1576_v10 = vld [vmem:[%s7810_s4 + $0x20] sm:$0xff] }
 0x1bd   :  { %6172 = vmatprep.subr.bf16.mxu1 %v7182_v5  ;;  %v1603_v2 = vand.u32 4294901760, %v1576_v10 }
 0x1be   :  { %v6251_v50 = vpack.c.bf16 %v7845_v49, %v7844_v51 }
 0x1bf   :  { %v7375_v31 = vpack.c.bf16 %v1606_v29, %v1603_v2  ;;  %v1713_v52 = vsub.f32 %v1576_v10, %v1603_v2 }
 0x1c0   :  { %6174 = vmatpush3.bf16.msra.mxu1 %v7182_v5  ;;  %v7846_v5 = vand.u32 4294901760, %v7105_v61  ;;  %v7852_v61 = vld [vmem:[#allocation5_spill] sm:$0xff] }
 0x1c1   :  { %6176 = vmatprep.subr.bf16.mxu1 %v7186_v8 }
 0x1c3   :  { %5405 = vmatmul.mubr.f32.vlgmr.msra.gmra.mrb[2].mxu1 %v7233_v30 }
 0x1c4   :  { %6178 = vmatpush3.bf16.msra.mxu1 %v7186_v8  ;;  %5439 = vmatprep.mubr.f32.mxu1 %v895_v55  ;;  %v7847_v8 = vand.u32 4294901760, %v7108_v62  ;;  %v7854_v62 = vld [vmem:[#allocation6_spill] sm:$0xff] }
 0x1c5   :  { %6180 = vmatprep.subr.bf16.mxu1 %v7190_v21 }
 0x1c8   :  { %6182 = vmatpush3.bf16.msra.mxu1 %v7190_v21  ;;  %v6255_v21 = vpack.c.bf16 %v7847_v8, %v7846_v5 }
 0x1c9   :  { %6184 = vmatprep.subr.bf16.mxu1 %v7194_v46 }
 0x1cc   :  { %6186 = vmatpush3.bf16.msra.mxu1 %v7194_v46  ;;  %v6259_v46 = vpack.c.bf16 %v7849_v26, %v7848_v54 }
 0x1cd   :  { %6188 = vmatprep.subr.bf16.mxu1 %v7198_v16 }
 0x1d0   :  { %6190 = vmatpush3.bf16.msra.mxu1 %v7198_v16  ;;  %v6263_v16 = vpack.c.bf16 %v7851_v20, %v7850_v19 }
 0x1d1   :  { %6192 = vmatprep.subr.bf16.mxu1 %v7202_v17 }
 0x1d4   :  { %6194 = vmatpush3.bf16.msra.mxu1 %v7202_v17  ;;  %v7853_v17 = vand.u32 4294901760, %v7852_v61  ;;  %v7402_v61 = vpack.c.bf16 %v1720_v59, %v1713_v52 }
 0x1d5   :  { %6196 = vmatprep.subr.bf16.mxu1 %v7209_v28 }
 0x1d8   :  { %6198 = vmatpush3.bf16.msra.mxu1 %v7209_v28  ;;  %v7855_v28 = vand.u32 4294901760, %v7854_v62 }
 0x1d9   :  { %6200 = vmatprep.subr.bf16.mxu1 %v7215_v60 }
 0x1dc   :  { %6202 = vmatpush3.bf16.msra.mxu1 %v7215_v60  ;;  %v6267_v60 = vpack.c.bf16 %v7855_v28, %v7853_v17  ;;  %v4773_v28 = vld [vmem:[%s7816_s10 + $0x3] ss:$0 sm:$0xff] }
 0x1dd   :  { %6204 = vmatprep.subr.bf16.mxu1 %v7219_v1 }
 0x1e0   :  { %6206 = vmatpush3.bf16.msra.mxu1 %v7219_v1  ;;  %v6247_v1 = vpack.c.bf16 %v7843_v41, %v7842_v40  ;;  %v1722_v40 = vsub.f32 %v1720_v59, %v1721_v48  ;;  %v1727_v41 = vsub.f32 %v1578_v39, %v1609_v12 }
 0x1e1   :  { %6208 = vmatprep.subr.bf16.mxu1 %v6941_v34 }
 0x1e2   :  { %v1723_v49 = vand.u32 4294901760, %v1722_v40 }
 0x1e3   :  { %5440 = vmatmul.mubr.f32.vlgmr.msra.gmra.mrb[2].mxu1 %v7238_v35 }
 0x1e4   :  { %6210 = vmatpush3.bf16.msra.mxu1 %v6941_v34  ;;  %5474 = vmatprep.mubr.f32.mxu1 %v896_v43 }
 0x1e5   :  { %6212 = vmatprep.subr.bf16.mxu1 %v6951_v58 }
 0x1e8   :  { %6214 = vmatpush3.bf16.msra.mxu1 %v6951_v58 }
 0x1e9   :  { %6216 = vmatprep.subr.bf16.mxu1 %v6961_v63 }
 0x1ec   :  { %6218 = vmatpush3.bf16.msra.mxu1 %v6961_v63 }
 0x1ed   :  { %6220 = vmatprep.subr.bf16.mxu1 %v6971_v4 }
 0x1f0   :  { %6222 = vmatpush3.bf16.msra.mxu1 %v6971_v4 }
 0x1f1   :  { %6224 = vmatprep.subr.bf16.mxu1 %v6987_v9 }
 0x1f4   :  { %6226 = vmatpush3.bf16.msra.mxu1 %v6987_v9 }
 0x1f5   :  { %6228 = vmatprep.subr.bf16.mxu1 %v7007_v27 }
 0x1f8   :  { %6230 = vmatpush3.bf16.msra.mxu1 %v7007_v27 }
 0x1f9   :  { %6232 = vmatprep.subr.bf16.mxu1 %v7037_v37 }
 0x1fc   :  { %6234 = vmatpush3.bf16.msra.mxu1 %v7037_v37 }
 0x1fd   :  { %6236 = vmatprep.subr.bf16.mxu1 %v7050_v42 }
 0x200   :  { %6238 = vmatpush3.bf16.msra.mxu1 %v7050_v42 }
 0x201   :  { %6240 = vmatprep.subr.bf16.mxu1 %v6239_v0 }
 0x203   :  { %5475 = vmatmul.mubr.f32.vlgmr.msra.gmra.mrb[2].mxu1 %v906_v22 }
 0x204   :  { %6242 = vmatpush3.bf16.msra.mxu1 %v6239_v0  ;;  %5509 = vmatprep.mubr.f32.mxu1 %v7235_v33  ;;  %v1714_v0 = vand.u32 4294901760, %v1713_v52 }
 0x205   :  { %6244 = vmatprep.subr.bf16.mxu1 %v6243_v57 }
 0x208   :  { %6246 = vmatpush3.bf16.msra.mxu1 %v6243_v57  ;;  %v1715_v57 = vsub.f32 %v1713_v52, %v1714_v0 }
 0x209   :  { %6248 = vmatprep.subr.bf16.mxu1 %v6247_v1 }
 0x20a   :  { %v1716_v51 = vand.u32 4294901760, %v1715_v57 }
 0x20c   :  { %6250 = vmatpush3.bf16.msra.mxu1 %v6247_v1  ;;  %v1734_v1 = vsub.f32 %v1579_v25, %v1612_v45  ;;  %v7394_v8 = vpack.c.bf16 %v1723_v49, %v1716_v51 }
 0x20d   :  { %6252 = vmatprep.subr.bf16.mxu1 %v6251_v50 }
 0x20e   :  { %v1735_v5 = vand.u32 4294901760, %v1734_v1  ;;  %v7404_v17 = vpack.c.bf16 %v1734_v1, %v1727_v41 }
 0x210   :  { %6254 = vmatpush3.bf16.msra.mxu1 %v6251_v50  ;;  %v1728_v50 = vand.u32 4294901760, %v1727_v41  ;;  %v1736_v54 = vsub.f32 %v1734_v1, %v1735_v5 }
 0x211   :  { %6256 = vmatprep.subr.bf16.mxu1 %v6255_v21 }
 0x212   :  { %v7415_v11 = vpack.c.bf16 %v1735_v5, %v1728_v50 }
 0x214   :  { %6258 = vmatpush3.bf16.msra.mxu1 %v6255_v21  ;;  %v1729_v21 = vsub.f32 %v1727_v41, %v1728_v50 }
 0x215   :  { %6260 = vmatprep.subr.bf16.mxu1 %v6259_v46 }
 0x216   :  { %v1730_v26 = vand.u32 4294901760, %v1729_v21 }
 0x218   :  { %6262 = vmatpush3.bf16.msra.mxu1 %v6259_v46  ;;  %v1737_v46 = vand.u32 4294901760, %v1736_v54 }
 0x219   :  { %6264 = vmatprep.subr.bf16.mxu1 %v6263_v16 }
 0x21a   :  { %v7396_v19 = vpack.c.bf16 %v1737_v46, %v1730_v26 }
 0x21c   :  { %6266 = vmatpush3.bf16.msra.mxu1 %v6263_v16 }
 0x21d   :  { %6268 = vmatprep.subr.bf16.mxu1 %v6267_v60 }
 0x220   :  { %6270 = vmatpush3.bf16.msra.mxu1 %v6267_v60 }
 0x221   :  { %6272 = vmatprep.subr.bf16.mxu1 %v6941_v34 }
 0x223   :  { %5510 = vmatmul.mubr.f32.vlgmr.msra.gmra.mrb[2].mxu1 %v7233_v30 }
 0x224   :  { %6274 = vmatpush3.bf16.msra.mxu1 %v6941_v34  ;;  %5544 = vmatprep.mubr.f32.mxu1 %v7235_v33  ;;  %v1572_v34 = vld [vmem:[%s7810_s4] sm:$0xff] }
 0x225   :  { %6276 = vmatprep.subr.bf16.mxu1 %v6951_v58 }
 0x228   :  { %6278 = vmatpush3.bf16.msra.mxu1 %v6951_v58  ;;  %v1573_v58 = vld [vmem:[%s7810_s4 + $0x8] sm:$0xff] }
 0x229   :  { %6280 = vmatprep.subr.bf16.mxu1 %v6961_v63 }
 0x22c   :  { %6282 = vmatpush3.bf16.msra.mxu1 %v6961_v63  ;;  %v1591_v63 = vand.u32 4294901760, %v1572_v34 }
 0x22d   :  { %6284 = vmatprep.subr.bf16.mxu1 %v6971_v4 }
 0x22e   :  { %v1685_v24 = vsub.f32 %v1572_v34, %v1591_v63 }
 0x230   :  { %6286 = vmatpush3.bf16.msra.mxu1 %v6971_v4  ;;  %v1594_v4 = vand.u32 4294901760, %v1573_v58  ;;  %v1686_v3 = vand.u32 4294901760, %v1685_v24 }
 0x231   :  { %6288 = vmatprep.subr.bf16.mxu1 %v6987_v9 }
 0x232   :  { %v1692_v38 = vsub.f32 %v1573_v58, %v1594_v4  ;;  %v1687_v13 = vsub.f32 %v1685_v24, %v1686_v3 }
 0x234   :  { %6290 = vmatpush3.bf16.msra.mxu1 %v6987_v9  ;;  %v7355_v9 = vpack.c.bf16 %v1594_v4, %v1591_v63  ;;  %v1693_v15 = vand.u32 4294901760, %v1692_v38  ;;  %v1688_v33 = vand.u32 4294901760, %v1687_v13  ;;  %v7398_v20 = vpack.c.bf16 %v1692_v38, %v1685_v24 }
 0x235   :  { %6292 = vmatprep.subr.bf16.mxu1 %v7007_v27 }
 0x236   :  { %6304 = vmatprep.subr.bf16.mxu0 %v7355_v9  ;;  %v1694_v47 = vsub.f32 %v1692_v38, %v1693_v15  ;;  %v7406_v62 = vpack.c.bf16 %v1693_v15, %v1686_v3 }
 0x237   :  { %6306 = vmatpush3.bf16.msra.mxu0 %v7355_v9 }
 0x238   :  { %6294 = vmatpush3.bf16.msra.mxu1 %v7007_v27  ;;  %v1574_v27 = vld [vmem:[%s7810_s4 + $0x10] sm:$0xff]  ;;  %v1695_v35 = vand.u32 4294901760, %v1694_v47 }
 0x239   :  { %6296 = vmatprep.subr.bf16.mxu1 %v7037_v37 }
 0x23a   :  { %v7389_v43 = vpack.c.bf16 %v1695_v35, %v1688_v33 }
 0x23c   :  { %6298 = vmatpush3.bf16.msra.mxu1 %v7037_v37  ;;  %v1575_v37 = vld [vmem:[%s7810_s4 + $0x18] sm:$0xff]  ;;  %s6669_s4 = smov 8  }
 0x23d   :  { %6300 = vmatprep.subr.bf16.mxu1 %v7050_v42  ;;  %v1600_v6 = vand.u32 4294901760, %v1575_v37 }
 0x240   :  { %6302 = vmatpush3.bf16.msra.mxu1 %v7050_v42  ;;  %v1597_v42 = vand.u32 4294901760, %v1574_v27 }
 0x242   :  { %v7365_v7 = vpack.c.bf16 %v1600_v6, %v1597_v42  ;;  %v1699_v56 = vsub.f32 %v1574_v27, %v1597_v42  ;;  %v7413_v27 = vpack.c.bf16 %v1721_v48, %v1714_v0 }
 0x243   :  { %5545 = vmatmul.mubr.f32.vlgmr.msra.gmra.mrb[2].mxu1 %v7233_v30  ;;  %v1706_v30 = vsub.f32 %v1575_v37, %v1600_v6 }
 0x244   :  { %6308 = vmatprep.subr.bf16.mxu0 %v7365_v7  ;;  %v1700_v55 = vand.u32 4294901760, %v1699_v56 }
 0x245   :  { %6310 = vmatpush3.bf16.msra.mxu0 %v7365_v7  ;;  %v1707_v22 = vand.u32 4294901760, %v1706_v30  ;;  %v7400_v16 = vpack.c.bf16 %v1706_v30, %v1699_v56 }
 0x246   :  { %6312 = vmatprep.subr.bf16.mxu0 %v7375_v31  ;;  %v1701_v53 = vsub.f32 %v1699_v56, %v1700_v55 }
 0x247   :  { %v1708_v18 = vsub.f32 %v1706_v30, %v1707_v22  ;;  %v7411_v60 = vpack.c.bf16 %v1707_v22, %v1700_v55 }
 0x248   :  { %v1702_v23 = vand.u32 4294901760, %v1701_v53 }
 0x249   :  { %6314 = vmatpush3.bf16.msra.mxu0 %v7375_v31  ;;  %v1709_v14 = vand.u32 4294901760, %v1708_v18 }
 0x24a   :  { %6316 = vmatprep.subr.bf16.mxu0 %v7385_v36 }
 0x24b   :  { %v7392_v32 = vpack.c.bf16 %v1709_v14, %v1702_v23 }
 0x24d   :  { %6318 = vmatpush3.bf16.msra.mxu0 %v7385_v36 }
 0x24e   :  { %6320 = vmatprep.subr.bf16.mxu0 %v7389_v43 }
 0x316   :  { %v5546_v34 = vpop.f32.mrb[2].mxu1 }
 0x317   :  { %v6559_v58 = vadd.f32 %v5546_v34, %v4773_v28  ;;  %v1487_v63 = vpop.f32.mrb[3].mxu1 }
 0x318   :  { %v6560_v4 = vadd.f32 %v4773_v28, %v1487_v63  ;;  %v43_v28 = vld [vmem:[%s7816_s10 + $0x4] sm:$0x1] }
 0x319   :  { %v1498_v37 = vmul.f32 0.01, %v6559_v58 }
 0x31a   :  { %v1497_v42 = vmul.f32 0.01, %v6560_v4 }
 0x31b   :  { %v1500_v6 = vmax.f32 %v6559_v58, %v1498_v37 }
 0x31c   :  { %v1499_v10 = vmax.f32 %v6560_v4, %v1497_v42  ;;  %v44_v4 = vld [vmem:[%s7816_s10 + $0x5] sm:$0x1] }
 0x31d   :  { %v1525_v2 = vsel %vm1501_vm2, %v1500_v6, 0.0 }
 0x31e   :  { %v1526_v29 = vrot.slane %v1525_v2, 4  ;;  %v1502_v24 = vsel %vm1501_vm2, %v1499_v10, 0.0 }
 0x31f   :  { %v1503_v38 = vrot.slane %v1502_v24, 4 }
 0x320   :  { %v1527_v39 = vadd.f32 %v1526_v29, %v1525_v2 }
 0x321   :  { %v1504_v25 = vadd.f32 %v1503_v38, %v1502_v24 }
 0x322   :  { %v1528_v12 = vrot.slane %v1527_v39, 2 }
 0x323   :  { %v1505_v45 = vrot.slane %v1504_v25, 2 }
 0x324   :  { %v1529_v3 = vadd.f32 %v1528_v12, %v1527_v39 }
 0x325   :  { %v1506_v15 = vadd.f32 %v1505_v45, %v1504_v25 }
 0x326   :  { %v1530_v13 = vrot.slane %v1529_v3, 1 }
 0x327   :  { %v1507_v47 = vrot.slane %v1506_v15, 1 }
 0x328   :  { %v1531_v56 = vadd.f32 %v1530_v13, %v1529_v3 }
 0x329   :  { %v1508_v30 = vadd.f32 %v1507_v47, %v1506_v15 }
 0x32a   :  { %v1532_v33 = vmul.f32 0.125, %v1531_v56 }
 0x32b   :  { %v1509_v35 = vmul.f32 0.125, %v1508_v30 }
 0x32c   :  { %v1533_v55 = vsub.f32 %v1500_v6, %v1532_v33 }
 0x32d   :  { %v1510_v22 = vsub.f32 %v1499_v10, %v1509_v35 }
 0x32e   :  { %v1534_v53 = vmul.f32 %v1533_v55, %v1533_v55 }
 0x32f   :  { %v1511_v18 = vmul.f32 %v1510_v22, %v1510_v22 }
 0x330   :  { %v1535_v52 = vsel %vm1501_vm2, %v1534_v53, 0.0 }
 0x331   :  { %v1536_v59 = vrot.slane %v1535_v52, 4  ;;  %v1512_v23 = vsel %vm1501_vm2, %v1511_v18, 0.0 }
 0x332   :  { %v1513_v14 = vrot.slane %v1512_v23, 4 }
 0x333   :  { %v1537_v0 = vadd.f32 %v1536_v59, %v1535_v52 }
 0x334   :  { %v1514_v48 = vadd.f32 %v1513_v14, %v1512_v23 }
 0x335   :  { %v1538_v57 = vrot.slane %v1537_v0, 2 }
 0x336   :  { %v1515_v40 = vrot.slane %v1514_v48, 2 }
 0x337   :  { %v1539_v41 = vadd.f32 %v1538_v57, %v1537_v0 }
 0x338   :  { %v1516_v1 = vadd.f32 %v1515_v40, %v1514_v48 }
 0x339   :  { %v1540_v51 = vrot.slane %v1539_v41, 1 }
 0x33a   :  { %v1517_v49 = vrot.slane %v1516_v1, 1 }
 0x33b   :  { %v1541_v50 = vadd.f32 %v1540_v51, %v1539_v41 }
 0x33c   :  { %v1518_v5 = vadd.f32 %v1517_v49, %v1516_v1 }
 0x33d   :  { %v1542_v21 = vmul.f32 0.125, %v1541_v50 }
 0x33e   :  { %v1519_v54 = vmul.f32 0.125, %v1518_v5 }
 0x33f   :  { %v1543_v26 = vadd.f32 1e-05, %v1542_v21 }
 0x340   :  { %v1520_v46 = vadd.f32 1e-05, %v1519_v54 }
 0x341   :  { %6635 = vrsqrt.f32 %v1543_v26 }
 0x342   :  { %6637 = vrsqrt.f32 %v1520_v46  ;;  %v4774_v46 = vld [vmem:[%s7816_s10 + $0x6] ss:$0 sm:$0xff] }
 0x34b   :  { %v6636_v34 = vpop.eup %6635 }
 0x34c   :  { %v6638_v58 = vpop.eup %6637  ;;  %v1545_v63 = vmul.f32 %v6636_v34, %v43_v28 }
 0x34d   :  { %v1522_v37 = vmul.f32 %v6638_v58, %v43_v28 }
 0x34e   :  { %v1546_v42 = vmul.f32 %v1545_v63, %v1532_v33  ;;  %v1555_v2 = vrot.slane %v1545_v63, %v7224_v44 }
 0x34f   :  { %v1523_v29 = vmul.f32 %v1522_v37, %v1509_v35  ;;  %v1551_v24 = vrot.slane %v1522_v37, %v7224_v44 }
 0x350   :  { %v1547_v38 = vsub.f32 %v44_v4, %v1546_v42  ;;  %v1569_v12 = vmul.f32 %v1555_v2, %v1500_v6 }
 0x351   :  { %v1524_v39 = vsub.f32 %v44_v4, %v1523_v29  ;;  %v1568_v3 = vmul.f32 %v1551_v24, %v1499_v10 }
 0x352   :  { %v1565_v25 = vrot.slane %v1547_v38, %v7224_v44 }
 0x353   :  { %v1561_v45 = vrot.slane %v1524_v39, %v7224_v44 }
 0x354   :  { %v1571_v15 = vadd.f32 %v1569_v12, %v1565_v25 }
 0x355   :  { %v1570_v13 = vadd.f32 %v1568_v3, %v1561_v45 }
 0x356   :  { %v1588_v47 = vsel %vm1501_vm2, %v1571_v15, 0 }
 0x357   :  { %v1673_v56 = vand.u32 4294901760, %v1588_v47  ;;  %v1585_v30 = vsel %vm1501_vm2, %v1570_v13, 0 }
 0x358   :  { %v1663_v33 = vand.u32 4294901760, %v1585_v30 }
 0x359   :  { %v1674_v55 = vsub.f32 %v1588_v47, %v1673_v56 }
 0x35a   :  { %v1664_v35 = vsub.f32 %v1585_v30, %v1663_v33 }
 0x35b   :  { %v1675_v22 = vand.u32 4294901760, %v1674_v55 }
 0x35c   :  { %v1665_v53 = vand.u32 4294901760, %v1664_v35 }
 0x35d   :  { %v1676_v18 = vsub.f32 %v1674_v55, %v1675_v22 }
 0x35e   :  { %v1666_v52 = vsub.f32 %v1664_v35, %v1665_v53 }
 0x35f   :  { %v1677_v23 = vand.u32 4294901760, %v1676_v18 }
 0x360   :  { %v1667_v59 = vand.u32 4294901760, %v1666_v52 }
 0x362   :  { %5563 = vmatprep.mubr.f32.mxu0 %v1667_v59 }
 0x363   :  { %5564 = vmatmul.mubr.f32.vlgmr.msra.gmra.mrb[2].mxu0 %v1677_v23 }
 0x364   :  { %6322 = vmatpush3.bf16.msra.mxu0 %v7389_v43  ;;  %5582 = vmatprep.mubr.f32.mxu0 %v1663_v33  ;;  %v2245_v43 = vld [vmem:[%s7811_s5] sm:$0xff] }
 0x365   :  { %6324 = vmatprep.subr.bf16.mxu0 %v7392_v32 }
 0x368   :  { %6326 = vmatpush3.bf16.msra.mxu0 %v7392_v32  ;;  %v2260_v32 = vand.u32 4294901760, %v2245_v43 }
 0x369   :  { %6328 = vmatprep.subr.bf16.mxu0 %v7394_v8 }
 0x36c   :  { %6330 = vmatpush3.bf16.msra.mxu0 %v7394_v8 }
 0x36d   :  { %6332 = vmatprep.subr.bf16.mxu0 %v7396_v19 }
 0x370   :  { %6334 = vmatpush3.bf16.msra.mxu0 %v7396_v19  ;;  %v2350_v19 = vsub.f32 %v2245_v43, %v2260_v32 }
 0x371   :  { %6336 = vmatprep.subr.bf16.mxu0 %v7398_v20 }
 0x373   :  { %5583 = vmatmul.mubr.f32.vlgmr.msra.gmra.mrb[2].mxu0 %v1673_v56 }
 0x374   :  { %6338 = vmatpush3.bf16.msra.mxu0 %v7398_v20  ;;  %5601 = vmatprep.mubr.f32.mxu0 %v1664_v35 }
 0x375   :  { %6340 = vmatprep.subr.bf16.mxu0 %v7400_v16 }
 0x378   :  { %6342 = vmatpush3.bf16.msra.mxu0 %v7400_v16 }
 0x379   :  { %6344 = vmatprep.subr.bf16.mxu0 %v7402_v61 }
 0x37c   :  { %6346 = vmatpush3.bf16.msra.mxu0 %v7402_v61 }
 0x37d   :  { %6348 = vmatprep.subr.bf16.mxu0 %v7404_v17 }
 0x380   :  { %6350 = vmatpush3.bf16.msra.mxu0 %v7404_v17  ;;  %v2351_v17 = vand.u32 4294901760, %v2350_v19 }
 0x381   :  { %6352 = vmatprep.subr.bf16.mxu0 %v7355_v9 }
 0x383   :  { %5602 = vmatmul.mubr.f32.vlgmr.msra.gmra.mrb[2].mxu0 %v1674_v55 }
 0x384   :  { %6354 = vmatpush3.bf16.msra.mxu0 %v7355_v9  ;;  %5620 = vmatprep.mubr.f32.mxu0 %v1665_v53 }
 0x385   :  { %6356 = vmatprep.subr.bf16.mxu0 %v7365_v7 }
 0x388   :  { %6358 = vmatpush3.bf16.msra.mxu0 %v7365_v7 }
 0x389   :  { %6360 = vmatprep.subr.bf16.mxu0 %v7375_v31 }
 0x38c   :  { %6362 = vmatpush3.bf16.msra.mxu0 %v7375_v31 }
 0x38d   :  { %6364 = vmatprep.subr.bf16.mxu0 %v7385_v36 }
 0x390   :  { %6366 = vmatpush3.bf16.msra.mxu0 %v7385_v36 }
 0x391   :  { %6368 = vmatprep.subr.bf16.mxu0 %v7406_v62 }
 0x393   :  { %5621 = vmatmul.mubr.f32.vlgmr.msra.gmra.mrb[2].mxu0 %v1675_v22 }
 0x394   :  { %6370 = vmatpush3.bf16.msra.mxu0 %v7406_v62  ;;  %5639 = vmatprep.mubr.f32.mxu0 %v1663_v33 }
 0x395   :  { %6372 = vmatprep.subr.bf16.mxu0 %v7411_v60 }
 0x398   :  { %6374 = vmatpush3.bf16.msra.mxu0 %v7411_v60 }
 0x399   :  { %6376 = vmatprep.subr.bf16.mxu0 %v7413_v27 }
 0x39c   :  { %6378 = vmatpush3.bf16.msra.mxu0 %v7413_v27  ;;  %v2352_v27 = vsub.f32 %v2350_v19, %v2351_v17 }
 0x39d   :  { %6380 = vmatprep.subr.bf16.mxu0 %v7415_v11 }
 0x39e   :  { %v2353_v14 = vand.u32 4294901760, %v2352_v27 }
 0x3a0   :  { %6382 = vmatpush3.bf16.msra.mxu0 %v7415_v11 }
 0x3a1   :  { %6384 = vmatprep.subr.bf16.mxu0 %v7355_v9 }
 0x3a3   :  { %5640 = vmatmul.mubr.f32.vlgmr.msra.gmra.mrb[2].mxu0 %v1673_v56 }
 0x3a4   :  { %6386 = vmatpush3.bf16.msra.mxu0 %v7355_v9  ;;  %5658 = vmatprep.mubr.f32.mxu0 %v1663_v33  ;;  %v2246_v9 = vld [vmem:[%s7811_s5 + $0x8] sm:$0xff] }
 0x3a5   :  { %6388 = vmatprep.subr.bf16.mxu0 %v7365_v7  ;;  %v2263_v8 = vand.u32 4294901760, %v2246_v9 }
 0x3a7   :  { %v2357_v20 = vsub.f32 %v2246_v9, %v2263_v8 }
 0x3a8   :  { %6390 = vmatpush3.bf16.msra.mxu0 %v7365_v7  ;;  %v7478_v7 = vpack.c.bf16 %v2263_v8, %v2260_v32 }
 0x3a9   :  { %6392 = vmatprep.subr.bf16.mxu0 %v7375_v31  ;;  %v2358_v62 = vand.u32 4294901760, %v2357_v20  ;;  %v7497_v5 = vpack.c.bf16 %v2357_v20, %v2350_v19 }
 0x3aa   :  { %6400 = vmatprep.subr.bf16.mxu1 %v7478_v7 }
 0x3ab   :  { %6402 = vmatpush3.bf16.msra.mxu1 %v7478_v7  ;;  %v2359_v6 = vsub.f32 %v2357_v20, %v2358_v62  ;;  %v7501_v54 = vpack.c.bf16 %v2358_v62, %v2351_v17 }
 0x3ac   :  { %6394 = vmatpush3.bf16.msra.mxu0 %v7375_v31  ;;  %v2247_v31 = vld [vmem:[%s7811_s5 + $0x10] sm:$0xff] }
 0x3ad   :  { %6396 = vmatprep.subr.bf16.mxu0 %v7385_v36  ;;  %v2266_v16 = vand.u32 4294901760, %v2247_v31  ;;  %v2360_v0 = vand.u32 4294901760, %v2359_v6 }
 0x3af   :  { %v2364_v10 = vsub.f32 %v2247_v31, %v2266_v16  ;;  %v7492_v40 = vpack.c.bf16 %v2360_v0, %v2353_v14  ;;  %v46_v14 = vld [vmem:[%s7816_s10 + $0x7] sm:$0x1] }
 0x3b0   :  { %6398 = vmatpush3.bf16.msra.mxu0 %v7385_v36  ;;  %v2248_v36 = vld [vmem:[%s7811_s5 + $0x18] sm:$0xff] }
 0x3b1   :  { %v2269_v61 = vand.u32 4294901760, %v2248_v36  ;;  %v2365_v48 = vand.u32 4294901760, %v2364_v10 }
 0x3b3   :  { %5659 = vmatmul.mubr.f32.vlgmr.msra.gmra.mrb[2].mxu0 %v1673_v56  ;;  %v7488_v60 = vpack.c.bf16 %v2269_v61, %v2266_v16  ;;  %v2371_v11 = vsub.f32 %v2248_v36, %v2269_v61  ;;  %v2366_v41 = vsub.f32 %v2364_v10, %v2365_v48 }
 0x3b5   :  { %6404 = vmatprep.subr.bf16.mxu1 %v7488_v60  ;;  %v2372_v57 = vand.u32 4294901760, %v2371_v11  ;;  %v2367_v51 = vand.u32 4294901760, %v2366_v41  ;;  %v7499_v21 = vpack.c.bf16 %v2371_v11, %v2364_v10  ;;  %v47_v41 = vld [vmem:[%s7816_s10 + $0x8] sm:$0x1] }
 0x3b6   :  { %6406 = vmatpush3.bf16.msra.mxu1 %v7488_v60 }
 0x3b7   :  { %v2373_v1 = vsub.f32 %v2371_v11, %v2372_v57  ;;  %6408 = vmatprep.subr.bf16.mxu1 %v7492_v40  ;;  %v7503_v26 = vpack.c.bf16 %v2372_v57, %v2365_v48 }
 0x3b9   :  { %v2374_v49 = vand.u32 4294901760, %v2373_v1 }
 0x3bb   :  { %v7495_v50 = vpack.c.bf16 %v2374_v49, %v2367_v51 }
 0x486   :  { %v5660_v28 = vpop.f32.mrb[2].mxu0 }
 0x487   :  { %v6561_v34 = vadd.f32 %v5660_v28, %v4774_v46  ;;  %v2160_v58 = vpop.f32.mrb[3].mxu0 }
 0x488   :  { %v6562_v63 = vadd.f32 %v4774_v46, %v2160_v58 }
 0x489   :  { %v2171_v4 = vmul.f32 0.01, %v6561_v34 }
 0x48a   :  { %v2170_v37 = vmul.f32 0.01, %v6562_v63 }
 0x48b   :  { %v2173_v42 = vmax.f32 %v6561_v34, %v2171_v4 }
 0x48c   :  { %v2172_v2 = vmax.f32 %v6562_v63, %v2170_v37 }
 0x48d   :  { %v2198_v29 = vsel %vm2174_vm3, %v2173_v42, 0.0 }
 0x48e   :  { %v2199_v24 = vrot.slane %v2198_v29, 4  ;;  %v2175_v38 = vsel %vm2174_vm3, %v2172_v2, 0.0 }
 0x48f   :  { %v2176_v39 = vrot.slane %v2175_v38, 4 }
 0x490   :  { %v2200_v25 = vadd.f32 %v2199_v24, %v2198_v29 }
 0x491   :  { %v2177_v12 = vadd.f32 %v2176_v39, %v2175_v38 }
 0x492   :  { %v2201_v45 = vrot.slane %v2200_v25, 2 }
 0x493   :  { %v2178_v3 = vrot.slane %v2177_v12, 2 }
 0x494   :  { %v2202_v15 = vadd.f32 %v2201_v45, %v2200_v25 }
 0x495   :  { %v2179_v13 = vadd.f32 %v2178_v3, %v2177_v12 }
 0x496   :  { %v2203_v47 = vrot.slane %v2202_v15, 1 }
 0x497   :  { %v2180_v56 = vrot.slane %v2179_v13, 1 }
 0x498   :  { %v2204_v30 = vadd.f32 %v2203_v47, %v2202_v15 }
 0x499   :  { %v2181_v33 = vadd.f32 %v2180_v56, %v2179_v13 }
 0x49a   :  { %v2205_v55 = vmul.f32 0.125, %v2204_v30 }
 0x49b   :  { %v2182_v35 = vmul.f32 0.125, %v2181_v33 }
 0x49c   :  { %v2206_v22 = vsub.f32 %v2173_v42, %v2205_v55 }
 0x49d   :  { %v2183_v53 = vsub.f32 %v2172_v2, %v2182_v35 }
 0x49e   :  { %v2207_v18 = vmul.f32 %v2206_v22, %v2206_v22 }
 0x49f   :  { %v2184_v52 = vmul.f32 %v2183_v53, %v2183_v53 }
 0x4a0   :  { %v2208_v59 = vsel %vm2174_vm3, %v2207_v18, 0.0 }
 0x4a1   :  { %v2209_v23 = vrot.slane %v2208_v59, 4  ;;  %v2185_v43 = vsel %vm2174_vm3, %v2184_v52, 0.0 }
 0x4a2   :  { %v2186_v9 = vrot.slane %v2185_v43, 4 }
 0x4a3   :  { %v2210_v32 = vadd.f32 %v2209_v23, %v2208_v59 }
 0x4a4   :  { %v2187_v8 = vadd.f32 %v2186_v9, %v2185_v43 }
 0x4a5   :  { %v2211_v31 = vrot.slane %v2210_v32, 2 }
 0x4a6   :  { %v2188_v36 = vrot.slane %v2187_v8, 2 }
 0x4a7   :  { %v2212_v19 = vadd.f32 %v2211_v31, %v2210_v32 }
 0x4a8   :  { %v2189_v20 = vadd.f32 %v2188_v36, %v2187_v8 }
 0x4a9   :  { %v2213_v16 = vrot.slane %v2212_v19, 1 }
 0x4aa   :  { %v2190_v61 = vrot.slane %v2189_v20, 1 }
 0x4ab   :  { %v2214_v17 = vadd.f32 %v2213_v16, %v2212_v19 }
 0x4ac   :  { %v2191_v62 = vadd.f32 %v2190_v61, %v2189_v20 }
 0x4ad   :  { %v2215_v27 = vmul.f32 0.125, %v2214_v17 }
 0x4ae   :  { %v2192_v6 = vmul.f32 0.125, %v2191_v62 }
 0x4af   :  { %v2216_v10 = vadd.f32 1e-05, %v2215_v27 }
 0x4b0   :  { %v2193_v11 = vadd.f32 1e-05, %v2192_v6  ;;  %v3695_v6 = vld [vmem:[%s7814_s8] sm:$0xff] }
 0x4b1   :  { %6639 = vrsqrt.f32 %v2216_v10  ;;  %v3696_v10 = vld [vmem:[%s7814_s8 + $0x8] sm:$0xff] }
 0x4b2   :  { %6641 = vrsqrt.f32 %v2193_v11  ;;  %v3711_v11 = vand.u32 4294901760, %v3695_v6 }
 0x4bb   :  { %v6640_v0 = vpop.eup %6639 }
 0x4bc   :  { %v6642_v48 = vpop.eup %6641  ;;  %v2218_v57 = vmul.f32 %v6640_v0, %v46_v14 }
 0x4bd   :  { %v2195_v1 = vmul.f32 %v6642_v48, %v46_v14  ;;  %v3714_v14 = vand.u32 4294901760, %v3696_v10  ;;  %v6670_v48 = vmov 0.0|0.0  }
 0x4be   :  { %v2219_v51 = vmul.f32 %v2218_v57, %v2205_v55  ;;  %v2228_v49 = vrot.slane %v2218_v57, %v7224_v44  ;;  %v3697_v57 = vld [vmem:[%s7814_s8 + $0x10] sm:$0xff] }
 0x4bf   :  { %v2196_v46 = vmul.f32 %v2195_v1, %v2182_v35  ;;  %v2224_v28 = vrot.slane %v2195_v1, %v7224_v44  ;;  %v7599_v0 = vpack.c.bf16 %v3714_v14, %v3711_v11  ;;  %v3717_v1 = vand.u32 4294901760, %v3697_v57 }
 0x4c0   :  { %v2220_v34 = vsub.f32 %v47_v41, %v2219_v51  ;;  %v2242_v4 = vmul.f32 %v2228_v49, %v2173_v42  ;;  %v4775_v42 = vld [vmem:[%s7816_s10 + $0x9] ss:$0 sm:$0xff] }
 0x4c1   :  { %v2197_v58 = vsub.f32 %v47_v41, %v2196_v46  ;;  %v2241_v29 = vmul.f32 %v2224_v28, %v2172_v2  ;;  %v3698_v41 = vld [vmem:[%s7814_s8 + $0x18] sm:$0xff]  ;;  %v3699_v46 = vld [vmem:[%s7814_s8 + $0x20] sm:$0xff]  ;;  %v3700_v28 = vld [vmem:[%s7814_s8 + $0x28] sm:$0xff] }
 0x4c2   :  { %v2238_v63 = vrot.slane %v2220_v34, %v7224_v44  ;;  %v3720_v51 = vand.u32 4294901760, %v3698_v41  ;;  %v3723_v34 = vand.u32 4294901760, %v3699_v46 }
 0x4c3   :  { %v2234_v37 = vrot.slane %v2197_v58, %v7224_v44  ;;  %v2788_v44 = vld [vmem:[%s7813_s7] sm:$0xff]  ;;  %v3726_v58 = vand.u32 4294901760, %v3700_v28 }
 0x4c4   :  { %v2244_v24 = vadd.f32 %v2242_v4, %v2238_v63  ;;  %v7611_v49 = vpack.c.bf16 %v3720_v51, %v3717_v1  ;;  %v7621_v63 = vsub.f32 %v3695_v6, %v3711_v11  ;;  %v7623_v4 = vsub.f32 %v3696_v10, %v3714_v14 }
 0x4c5   :  { %v2243_v38 = vadd.f32 %v2241_v29, %v2234_v37  ;;  %v7625_v37 = vpack.c.bf16 %v3726_v58, %v3723_v34  ;;  %v3701_v29 = vld [vmem:[%s7814_s8 + $0x30] sm:$0xff] }
 0x4c6   :  { %v2257_v39 = vsel %vm2174_vm3, %v2244_v24, 0  ;;  %v3702_v24 = vld [vmem:[%s7814_s8 + $0x38] sm:$0xff] }
 0x4c7   :  { %v2338_v25 = vand.u32 4294901760, %v2257_v39  ;;  %v2254_v12 = vsel %vm2174_vm3, %v2243_v38, 0  ;;  %v7633_v38 = vsub.f32 %v3697_v57, %v3717_v1 }
 0x4c8   :  { %v2328_v45 = vand.u32 4294901760, %v2254_v12 }
 0x4c9   :  { %v2339_v3 = vsub.f32 %v2257_v39, %v2338_v25  ;;  %v7635_v39 = vsub.f32 %v3698_v41, %v3720_v51 }
 0x4ca   :  { %v2329_v15 = vsub.f32 %v2254_v12, %v2328_v45  ;;  %v7640_v12 = vsub.f32 %v3700_v28, %v3726_v58 }
 0x4cb   :  { %v2340_v13 = vand.u32 4294901760, %v2339_v3 }
 0x4cc   :  { %v2330_v47 = vand.u32 4294901760, %v2329_v15 }
 0x4cd   :  { %v2341_v56 = vsub.f32 %v2339_v3, %v2340_v13 }
 0x4ce   :  { %v2331_v30 = vsub.f32 %v2329_v15, %v2330_v47 }
 0x4cf   :  { %v2342_v55 = vand.u32 4294901760, %v2341_v56 }
 0x4d0   :  { %v2332_v33 = vand.u32 4294901760, %v2331_v30 }
 0x4d2   :  { %5669 = vmatprep.mubr.f32.mxu1 %v2332_v33 }
 0x4d3   :  { %5670 = vmatmul.mubr.f32.vlgmr.msra.gmra.mrb[4].mxu1 %v2342_v55 }
 0x4d4   :  { %6410 = vmatpush3.bf16.msra.mxu1 %v7492_v40  ;;  %5680 = vmatprep.mubr.f32.mxu1 %v2328_v45  ;;  %v2794_v40 = vand.u32 4294901760, %v2788_v44 }
 0x4d5   :  { %6412 = vmatprep.subr.bf16.mxu1 %v7495_v50 }
 0x4d8   :  { %6414 = vmatpush3.bf16.msra.mxu1 %v7495_v50  ;;  %v2871_v50 = vsub.f32 %v2788_v44, %v2794_v40 }
 0x4d9   :  { %6416 = vmatprep.subr.bf16.mxu1 %v7497_v5 }
 0x4db   :  { %5681 = vmatmul.mubr.f32.vlgmr.msra.gmra.mrb[4].mxu1 %v2338_v25 }
 0x4dc   :  { %6418 = vmatpush3.bf16.msra.mxu1 %v7497_v5  ;;  %5691 = vmatprep.mubr.f32.mxu1 %v2329_v15  ;;  %v2872_v5 = vand.u32 4294901760, %v2871_v50  ;;  %v3796_v15 = vand.u32 4294901760, %v7621_v63 }
 0x4dd   :  { %6420 = vmatprep.subr.bf16.mxu1 %v7499_v21 }
 0x4de   :  { %v3797_v33 = vsub.f32 %v7621_v63, %v3796_v15 }
 0x4e0   :  { %6422 = vmatpush3.bf16.msra.mxu1 %v7499_v21  ;;  %v2873_v21 = vsub.f32 %v2871_v50, %v2872_v5  ;;  %v3798_v44 = vand.u32 4294901760, %v3797_v33 }
 0x4e1   :  { %6424 = vmatprep.subr.bf16.mxu1 %v7478_v7 }
 0x4e3   :  { %5692 = vmatmul.mubr.f32.vlgmr.msra.gmra.mrb[4].mxu1 %v2339_v3  ;;  %v3732_v3 = vand.u32 4294901760, %v3702_v24 }
 0x4e4   :  { %6426 = vmatpush3.bf16.msra.mxu1 %v7478_v7  ;;  %5702 = vmatprep.mubr.f32.mxu1 %v2330_v47 }
 0x4e5   :  { %6428 = vmatprep.subr.bf16.mxu1 %v7488_v60  ;;  %v7649_v30 = vsub.f32 %v3702_v24, %v3732_v3 }
 0x4e8   :  { %6430 = vmatpush3.bf16.msra.mxu1 %v7488_v60 }
 0x4e9   :  { %6432 = vmatprep.subr.bf16.mxu1 %v7501_v54 }
 0x4eb   :  { %5703 = vmatmul.mubr.f32.vlgmr.msra.gmra.mrb[4].mxu1 %v2340_v13  ;;  %v3803_v13 = vand.u32 4294901760, %v7623_v4 }
 0x4ec   :  { %6434 = vmatpush3.bf16.msra.mxu1 %v7501_v54  ;;  %5713 = vmatprep.mubr.f32.mxu1 %v2328_v45  ;;  %v6667_v54 = vmov 0.0  }
 0x4ed   :  { %6436 = vmatprep.subr.bf16.mxu1 %v7503_v26  ;;  %4745 = vst [vmem:[#allocation2] sm:$0xff] %v6667_v54  ;;  %5727 = vmatprep.subr.mxu0 %v6667_v54  ;;  %v3804_v55 = vsub.f32 %v7623_v4, %v3803_v13 }
 0x4ee   :  { %5728 = vmatpush3.msra.mxu0 %v2794_v40  ;;  %5729 = vmatprep.mubr.msk.f32.mxu0 %vm6668_vm4, %v6667_v54 }
 0x4ef   :  { %5737 = vmatprep.subr.mxu0 %v6667_v54 }
 0x4f0   :  { %6438 = vmatpush3.bf16.msra.mxu1 %v7503_v26 }
 0x4f1   :  { %6440 = vmatprep.subr.bf16.mxu1 %v7478_v7 }
 0x4f3   :  { %5714 = vmatmul.mubr.f32.vlgmr.msra.gmra.mrb[4].mxu1 %v2338_v25 }
 0x4f4   :  { %6442 = vmatpush3.bf16.msra.mxu1 %v7478_v7  ;;  %5724 = vmatprep.mubr.f32.mxu1 %v2328_v45  ;;  %v2874_v7 = vand.u32 4294901760, %v2873_v21  ;;  %v3729_v45 = vand.u32 4294901760, %v3701_v29 }
 0x4f5   :  { %6444 = vmatprep.subr.bf16.mxu1 %v7488_v60 }
 0x4f6   :  { %v7645_v47 = vpack.c.bf16 %v3732_v3, %v3729_v45  ;;  %v7647_v56 = vsub.f32 %v3701_v29, %v3729_v45 }
 0x4f8   :  { %6446 = vmatpush3.bf16.msra.mxu1 %v7488_v60  ;;  %v2787_v60 = vld [vmem:[%s7812_s6] sm:$0xff] }
 0x4f9   :  { %5732 = vmatprep.subr.mxu1 %v6667_v54  ;;  %v3243_v26 = vand.u32 4294901760, %v2787_v60 }
 0x4fb   :  { %5725 = vmatmul.mubr.f32.vlgmr.msra.gmra.mrb[4].mxu1 %v2338_v25  ;;  %v3320_v35 = vsub.f32 %v2787_v60, %v3243_v26  ;;  %v7638_v25 = vsub.f32 %v3699_v46, %v3723_v34 }
 0x4fc   :  { %5733 = vmatpush3.msra.mxu1 %v2874_v7  ;;  %5734 = vmatprep.mubr.msk.f32.mxu1 %vm6668_vm4, %v6667_v54 }
 0x4fd   :  { %5742 = vmatprep.subr.mxu1 %v6667_v54  ;;  %v3321_v23 = vand.u32 4294901760, %v3320_v35 }
 0x4ff   :  { %v3322_v31 = vsub.f32 %v3320_v35, %v3321_v23 }
 0x501   :  { %v3323_v16 = vand.u32 4294901760, %v3322_v31 }
 0x5ce   :  { %v5726_v2 = vpop.f32.mrb[4].mxu1 }
 0x5cf   :  { %v6563_v22 = vadd.f32 %v5726_v2, %v4775_v42  ;;  %v2777_v53 = vpop.f32.mrb[5].mxu1  ;;  %v3824_v2 = vand.u32 4294901760, %v7638_v25 }
 0x5d0   :  { %v6564_v18 = vadd.f32 %v4775_v42, %v2777_v53 }
 0x5d1   :  { %v2791_v52 = vsel %vm2789_vm5, %v6563_v22, 0  ;;  %4747 = vrot.lane.b32.xlu0 %v6563_v22, %s6669_s4  ;;  %v3825_v53 = vsub.f32 %v7638_v25, %v3824_v2 }
 0x5d2   :  { %v2859_v59 = vand.u32 4294901760, %v2791_v52  ;;  %4746 = vst.msk [vmem:[#allocation2] sm:$0xff] %vm2789_vm5, %v6564_v18  ;;  %v3240_v43 = vsel %vm2789_vm5, %v6564_v18, 0 }
 0x5d3   :  { %v3308_v32 = vand.u32 4294901760, %v3240_v43 }
 0x5d4   :  { %v2860_v9 = vsub.f32 %v2791_v52, %v2859_v59  ;;  %5735 = vmatmul.mubr.f32.vlgmr.msra.gmra.mrb[6].mxu1 %v2859_v59  ;;  %v3826_v52 = vand.u32 4294901760, %v3825_v53 }
 0x5d5   :  { %5743 = vmatpush3.msra.mxu1 %v2794_v40  ;;  %5744 = vmatprep.mubr.msk.f32.mxu1 %vm6668_vm4, %v6667_v54  ;;  %v3309_v19 = vsub.f32 %v3240_v43, %v3308_v32  ;;  %v3845_v43 = vand.u32 4294901760, %v7649_v30 }
 0x5d6   :  { %v2861_v8 = vand.u32 4294901760, %v2860_v9  ;;  %5752 = vmatprep.subr.mxu1 %v6667_v54 }
 0x5d7   :  { %v3310_v61 = vand.u32 4294901760, %v3309_v19 }
 0x5d8   :  { %5745 = vmatmul.mubr.f32.vlgmr.msra.gmra.mrb[8].mxu1 %v2861_v8  ;;  %v2862_v36 = vsub.f32 %v2860_v9, %v2861_v8  ;;  %v3846_v8 = vsub.f32 %v7649_v30, %v3845_v43 }
 0x5d9   :  { %5753 = vmatpush3.msra.mxu1 %v2794_v40  ;;  %5754 = vmatprep.mubr.msk.f32.mxu1 %vm6668_vm4, %v6667_v54  ;;  %v3311_v17 = vsub.f32 %v3309_v19, %v3310_v61  ;;  %v3810_v40 = vand.u32 4294901760, %v7633_v38 }
 0x5da   :  { %v2863_v20 = vand.u32 4294901760, %v2862_v36  ;;  %5762 = vmatprep.subr.mxu1 %v6667_v54  ;;  %v3847_v36 = vand.u32 4294901760, %v3846_v8 }
 0x5db   :  { %v3312_v62 = vand.u32 4294901760, %v3311_v17  ;;  %v3811_v21 = vsub.f32 %v7633_v38, %v3810_v40  ;;  %v6481_v17 = vpack.c.bf16 %v7649_v30, %v7647_v56 }
 0x5dc   :  { %5730 = vmatmul.mubr.f32.vlgmr.msra.gmra.mrb[4].mxu0 %v2863_v20  ;;  %5755 = vmatmul.mubr.f32.vlgmr.msra.gmra.mrb[10].mxu1 %v2859_v59  ;;  %v6472_v20 = vpack.c.bf16 %v7623_v4, %v7621_v63  ;;  %v4250_v63 = vld [vmem:[%s7815_s9 + $0x8] sm:$0xff] }
 0x5dd   :  { %5738 = vmatpush3.msra.mxu0 %v2871_v50  ;;  %5739 = vmatprep.mubr.msk.f32.mxu0 %vm6668_vm4, %v6667_v54  ;;  %v3817_v50 = vand.u32 4294901760, %v7635_v39 }
 0x5de   :  { %5747 = vmatprep.subr.mxu0 %v6667_v54  ;;  %5763 = vmatpush3.msra.mxu1 %v3323_v16  ;;  %v6475_v16 = vpack.c.bf16 %v7635_v39, %v7633_v38  ;;  %v4264_v38 = vand.u32 4294901760, %v4250_v63 }
 0x5df   :  { %5764 = vmatprep.mubr.msk.f32.mxu1 %vm6668_vm4, %v6667_v54  ;;  %5772 = vmatprep.subr.mxu1 %v6667_v54  ;;  %v3818_v7 = vsub.f32 %v7635_v39, %v3817_v50 }
 0x5e0   :  { %5740 = vmatmul.mubr.f32.vlgmr.msra.gmra.mrb[6].mxu0 %v2860_v9  ;;  %5765 = vmatmul.mubr.f32.vlgmr.msra.gmra.mrb[12].mxu1 %v3308_v32 }
 0x5e1   :  { %5748 = vmatpush3.msra.mxu0 %v2872_v5  ;;  %5749 = vmatprep.mubr.msk.f32.mxu0 %vm6668_vm4, %v6667_v54  ;;  %v3805_v5 = vand.u32 4294901760, %v3804_v55  ;;  %v3819_v42 = vand.u32 4294901760, %v3818_v7 }
 0x5e2   :  { %5757 = vmatprep.subr.mxu0 %v6667_v54  ;;  %5773 = vmatpush3.msra.mxu1 %v3243_v26 }
 0x5e3   :  { %5774 = vmatprep.mubr.msk.f32.mxu1 %vm6668_vm4, %v6667_v54  ;;  %5782 = vmatprep.subr.mxu1 %v6667_v54  ;;  %v7659_v60 = vpack.c.bf16 %v3805_v5, %v3798_v44 }
 0x5e4   :  { %5750 = vmatmul.mubr.f32.vlgmr.msra.gmra.mrb[8].mxu0 %v2859_v59  ;;  %5775 = vmatmul.mubr.f32.vlgmr.msra.gmra.mrb[14].mxu1 %v3310_v61  ;;  %v6478_v61 = vpack.c.bf16 %v7640_v12, %v7638_v25  ;;  %v4348_v25 = vsub.f32 %v4250_v63, %v4264_v38 }
 0x5e5   :  { %5758 = vmatpush3.msra.mxu0 %v3243_v26  ;;  %5759 = vmatprep.mubr.msk.f32.mxu0 %vm6668_vm4, %v6667_v54 }
 0x5e6   :  { %5767 = vmatprep.subr.mxu0 %v6667_v54  ;;  %5783 = vmatpush3.msra.mxu1 %v3243_v26  ;;  %v3812_v26 = vand.u32 4294901760, %v3811_v21 }
 0x5e7   :  { %5784 = vmatprep.mubr.msk.f32.mxu1 %vm6668_vm4, %v6667_v54  ;;  %6519 = vmatprep.subr.bf16.mxu1 %v6670_v48 }
 0x5e8   :  { %5760 = vmatmul.mubr.f32.vlgmr.msra.gmra.mrb[10].mxu0 %v3312_v62  ;;  %5785 = vmatmul.mubr.f32.vlgmr.msra.gmra.mrb[16].mxu1 %v3308_v32  ;;  %v7663_v22 = vpack.c.bf16 %v3819_v42, %v3812_v26  ;;  %v7681_v62 = vpack.c.bf16 %v3803_v13, %v3796_v15 }
 0x5e9   :  { %5768 = vmatpush3.msra.mxu0 %v3320_v35  ;;  %5769 = vmatprep.mubr.msk.f32.mxu0 %vm6668_vm4, %v6667_v54  ;;  %v3831_v35 = vand.u32 4294901760, %v7640_v12 }
 0x5ea   :  { %5777 = vmatprep.subr.mxu0 %v6667_v54  ;;  %5909 = vmatprep.mubr.msk.f32.mxu1 %vm6668_vm4, %v6667_v54 }
 0x5eb   :  { %v3832_v18 = vsub.f32 %v7640_v12, %v3831_v35  ;;  %v7685_v6 = vpack.c.bf16 %v3831_v35, %v3824_v2  ;;  %v4252_v12 = vld [vmem:[%s7815_s9 + $0x18] sm:$0xff] }
 0x5ec   :  { %5770 = vmatmul.mubr.f32.vlgmr.msra.gmra.mrb[12].mxu0 %v3309_v19 }
 0x5ed   :  { %5778 = vmatpush3.msra.mxu0 %v3321_v23  ;;  %5779 = vmatprep.mubr.msk.f32.mxu0 %vm6668_vm4, %v6667_v54  ;;  %v3833_v59 = vand.u32 4294901760, %v3832_v18  ;;  %v3838_v23 = vand.u32 4294901760, %v7647_v56 }
 0x5ee   :  { %6447 = vmatprep.subr.bf16.mxu0 %v6670_v48 }
 0x5ef   :  { %v7669_v9 = vpack.c.bf16 %v3833_v59, %v3826_v52  ;;  %v7687_v10 = vpack.c.bf16 %v3845_v43, %v3838_v23 }
 0x5f0   :  { %5780 = vmatmul.mubr.f32.vlgmr.msra.gmra.mrb[14].mxu0 %v3308_v32  ;;  %v3839_v32 = vsub.f32 %v7647_v56, %v3838_v23  ;;  %v4270_v56 = vand.u32 4294901760, %v4252_v12 }
 0x5f1   :  { %5803 = vmatprep.mubr.msk.f32.mxu0 %vm6668_vm4, %v6667_v54  ;;  %6449 = vmatpush3.bf16.msra.mxu0 %v7599_v0 }
 0x5f2   :  { %6450 = vmatprep.subr.bf16.mxu0 %v6670_v48  ;;  %v3840_v31 = vand.u32 4294901760, %v3839_v32  ;;  %v4776_v32 = vld [vmem:[%s7816_s10 + $0xa] ss:$0 sm:$0xff] }
 0x5f4   :  { %v6469_v19 = vpack.c.bf16 %v3847_v36, %v3840_v31 }
 0x5f5   :  { %6452 = vmatpush3.bf16.msra.mxu0 %v7611_v49 }
 0x5f6   :  { %6453 = vmatprep.subr.bf16.mxu0 %v6670_v48 }
 0x5f9   :  { %6455 = vmatpush3.bf16.msra.mxu0 %v7625_v37 }
 0x5fa   :  { %6456 = vmatprep.subr.bf16.mxu0 %v6670_v48 }
 0x5fd   :  { %6458 = vmatpush3.bf16.msra.mxu0 %v7645_v47 }
 0x5fe   :  { %6459 = vmatprep.subr.bf16.mxu0 %v6670_v48 }
 0x643   :  { %v4748_v27 = vpop.permute.xlu0 %4747 }
 0x644   :  { %4751 = vst.msk [vmem:[#allocation2] sm:$0xff] %vm4750_vm6, %v4748_v27  ;;  %v7683_v27 = vpack.c.bf16 %v3817_v50, %v3810_v40 }
 0x6a7   :  { %v2941_v11 = vpop.f32.mrb[6].mxu1 }
 0x6a8   :  { %v5736_v14 = vpop.f32.mrb[7].mxu1 }
 0x6ab   :  { %v3089_v57 = vpop.f32.mrb[8].mxu1 }
 0x6ac   :  { %v5746_v41 = vpop.f32.mrb[9].mxu1 }
 0x6af   :  { %v2865_v1 = vpop.f32.mrb[4].mxu0  ;;  %v3235_v51 = vpop.f32.mrb[10].mxu1 }
 0x6b0   :  { %v2942_v46 = vadd.f32 %v2941_v11, %v2865_v1  ;;  %v5731_v28 = vpop.f32.mrb[5].mxu0  ;;  %v5756_v34 = vpop.f32.mrb[11].mxu1 }
 0x6b3   :  { %v3015_v58 = vpop.f32.mrb[6].mxu0  ;;  %v3390_v29 = vpop.f32.mrb[12].mxu1 }
 0x6b4   :  { %v3016_v24 = vadd.f32 %v3015_v58, %v2942_v46  ;;  %v5741_v45 = vpop.f32.mrb[7].mxu0  ;;  %v5766_v3 = vpop.f32.mrb[13].mxu1 }
 0x6b6   :  { %v3090_v15 = vadd.f32 %v3089_v57, %v3016_v24 }
 0x6b7   :  { %v3163_v13 = vpop.f32.mrb[8].mxu0  ;;  %v3538_v33 = vpop.f32.mrb[14].mxu1 }
 0x6b8   :  { %v3164_v55 = vadd.f32 %v3163_v13, %v3090_v15  ;;  %v5751_v44 = vpop.f32.mrb[9].mxu0  ;;  %v5776_v40 = vpop.f32.mrb[15].mxu1  ;;  %v4777_v13 = vld [vmem:[%s7816_s10 + $0xb] ss:$0 sm:$0xff] }
 0x6ba   :  { %v3236_v50 = vadd.f32 %v3235_v51, %v3164_v55 }
 0x6bb   :  { %v3314_v5 = vpop.f32.mrb[10].mxu0  ;;  %v3684_v21 = vpop.f32.mrb[16].mxu1 }
 0x6bc   :  { %v3315_v7 = vadd.f32 %v3314_v5, %v3236_v50  ;;  %v5761_v26 = vpop.f32.mrb[11].mxu0  ;;  %v5786_v42 = vpop.f32.mrb[17].mxu1 }
 0x6be   :  { %v3391_v2 = vadd.f32 %v3390_v29, %v3315_v7 }
 0x6bf   :  { %v3464_v35 = vpop.f32.mrb[12].mxu0 }
 0x6c0   :  { %v3465_v53 = vadd.f32 %v3464_v35, %v3391_v2  ;;  %v5771_v18 = vpop.f32.mrb[13].mxu0  ;;  %v4778_v35 = vld [vmem:[%s7816_s10 + $0xc] ss:$0 sm:$0xff] }
 0x6c2   :  { %v3539_v52 = vadd.f32 %v3538_v33, %v3465_v53 }
 0x6c3   :  { %v3612_v59 = vpop.f32.mrb[14].mxu0 }
 0x6c4   :  { %v3613_v23 = vadd.f32 %v3612_v59, %v3539_v52  ;;  %v5781_v43 = vpop.f32.mrb[15].mxu0 }
 0x6c6   :  { %v3685_v8 = vadd.f32 %v3684_v21, %v3613_v23 }
 0x6c8   :  { %v3692_v31 = vadd.f32 %v4776_v32, %v3685_v8 }
 0x6ca   :  { %v3693_v36 = vmul.f32 0.01, %v3692_v31 }
 0x6cc   :  { %v3694_v11 = vmax.f32 %v3692_v31, %v3693_v36 }
 0x6ce   :  { %v3708_v14 = vsel %vm1501_vm2, %v3694_v11, 0 }
 0x6cf   :  { %v3783_v57 = vand.u32 4294901760, %v3708_v14 }
 0x6d1   :  { %v3784_v41 = vsub.f32 %v3708_v14, %v3783_v57 }
 0x6d3   :  { %v3785_v1 = vand.u32 4294901760, %v3784_v41 }
 0x6d5   :  { %v3786_v51 = vsub.f32 %v3784_v41, %v3785_v1 }
 0x6d7   :  { %v3787_v46 = vand.u32 4294901760, %v3786_v51 }
 0x6d9   :  { %5804 = vmatmul.mubr.f32.vlgmr.msra.gmra.mrb[16].mxu0 %v3787_v46 }
 0x6da   :  { %6461 = vmatpush3.bf16.msra.mxu0 %v7659_v60  ;;  %5822 = vmatprep.mubr.msk.f32.mxu0 %vm6668_vm4, %v6667_v54  ;;  %v4349_v60 = vand.u32 4294901760, %v4348_v25 }
 0x6db   :  { %6462 = vmatprep.subr.bf16.mxu0 %v6670_v48 }
 0x6de   :  { %6464 = vmatpush3.bf16.msra.mxu0 %v7663_v22 }
 0x6df   :  { %6465 = vmatprep.subr.bf16.mxu0 %v6670_v48 }
 0x6e2   :  { %6467 = vmatpush3.bf16.msra.mxu0 %v7669_v9 }
 0x6e3   :  { %6468 = vmatprep.subr.bf16.mxu0 %v6670_v48 }
 0x6e6   :  { %6470 = vmatpush3.bf16.msra.mxu0 %v6469_v19  ;;  %v4362_v19 = vsub.f32 %v4252_v12, %v4270_v56 }
 0x6e7   :  { %6471 = vmatprep.subr.bf16.mxu0 %v6670_v48 }
 0x6e9   :  { %5823 = vmatmul.mubr.f32.vlgmr.msra.gmra.mrb[16].mxu0 %v3783_v57 }
 0x6ea   :  { %6473 = vmatpush3.bf16.msra.mxu0 %v6472_v20  ;;  %5841 = vmatprep.mubr.msk.f32.mxu0 %vm6668_vm4, %v6667_v54 }
 0x6eb   :  { %6474 = vmatprep.subr.bf16.mxu0 %v6670_v48 }
 0x6ee   :  { %6476 = vmatpush3.bf16.msra.mxu0 %v6475_v16  ;;  %v4350_v16 = vsub.f32 %v4348_v25, %v4349_v60 }
 0x6ef   :  { %6477 = vmatprep.subr.bf16.mxu0 %v6670_v48 }
 0x6f2   :  { %6479 = vmatpush3.bf16.msra.mxu0 %v6478_v61 }
 0x6f3   :  { %6480 = vmatprep.subr.bf16.mxu0 %v6670_v48 }
 0x6f6   :  { %6482 = vmatpush3.bf16.msra.mxu0 %v6481_v17 }
 0x6f7   :  { %6483 = vmatprep.subr.bf16.mxu0 %v6670_v48 }
 0x6f9   :  { %5842 = vmatmul.mubr.f32.vlgmr.msra.gmra.mrb[16].mxu0 %v3784_v41 }
 0x6fa   :  { %6485 = vmatpush3.bf16.msra.mxu0 %v7599_v0  ;;  %5860 = vmatprep.mubr.msk.f32.mxu0 %vm6668_vm4, %v6667_v54 }
 0x6fb   :  { %6486 = vmatprep.subr.bf16.mxu0 %v6670_v48 }
 0x6fe   :  { %6488 = vmatpush3.bf16.msra.mxu0 %v7611_v49 }
 0x6ff   :  { %6489 = vmatprep.subr.bf16.mxu0 %v6670_v48 }
 0x702   :  { %6491 = vmatpush3.bf16.msra.mxu0 %v7625_v37 }
 0x703   :  { %6492 = vmatprep.subr.bf16.mxu0 %v6670_v48 }
 0x706   :  { %6494 = vmatpush3.bf16.msra.mxu0 %v7645_v47 }
 0x707   :  { %6495 = vmatprep.subr.bf16.mxu0 %v6670_v48 }
 0x709   :  { %5861 = vmatmul.mubr.f32.vlgmr.msra.gmra.mrb[16].mxu0 %v3785_v1 }
 0x70a   :  { %6497 = vmatpush3.bf16.msra.mxu0 %v7681_v62  ;;  %5879 = vmatprep.mubr.msk.f32.mxu0 %vm6668_vm4, %v6667_v54  ;;  %v4363_v62 = vand.u32 4294901760, %v4362_v19 }
 0x70b   :  { %6498 = vmatprep.subr.bf16.mxu0 %v6670_v48 }
 0x70e   :  { %6500 = vmatpush3.bf16.msra.mxu0 %v7683_v27  ;;  %v4351_v27 = vand.u32 4294901760, %v4350_v16 }
 0x70f   :  { %6501 = vmatprep.subr.bf16.mxu0 %v6670_v48 }
 0x712   :  { %6503 = vmatpush3.bf16.msra.mxu0 %v7685_v6 }
 0x713   :  { %6504 = vmatprep.subr.bf16.mxu0 %v6670_v48 }
 0x716   :  { %6506 = vmatpush3.bf16.msra.mxu0 %v7687_v10  ;;  %v4364_v10 = vsub.f32 %v4362_v19, %v4363_v62 }
 0x717   :  { %6507 = vmatprep.subr.bf16.mxu0 %v6670_v48 }
 0x718   :  { %v4365_v58 = vand.u32 4294901760, %v4364_v10 }
 0x719   :  { %5880 = vmatmul.mubr.f32.vlgmr.msra.gmra.mrb[16].mxu0 %v3783_v57 }
 0x71a   :  { %6509 = vmatpush3.bf16.msra.mxu0 %v7599_v0  ;;  %5898 = vmatprep.mubr.msk.f32.mxu0 %vm6668_vm4, %v6667_v54  ;;  %v4249_v0 = vld [vmem:[%s7815_s9] sm:$0xff] }
 0x71b   :  { %6510 = vmatprep.subr.bf16.mxu0 %v6670_v48  ;;  %v4261_v4 = vand.u32 4294901760, %v4249_v0 }
 0x71d   :  { %v4341_v39 = vsub.f32 %v4249_v0, %v4261_v4 }
 0x71e   :  { %6512 = vmatpush3.bf16.msra.mxu0 %v7611_v49  ;;  %v7755_v49 = vpack.c.bf16 %v4264_v38, %v4261_v4 }
 0x71f   :  { %6513 = vmatprep.subr.bf16.mxu0 %v6670_v48  ;;  %v4342_v30 = vand.u32 4294901760, %v4341_v39  ;;  %v6532_v24 = vpack.c.bf16 %v4348_v25, %v4341_v39 }
 0x720   :  { %6521 = vmatpush3.bf16.msra.mxu1 %v7755_v49 }
 0x721   :  { %6522 = vmatprep.subr.bf16.mxu1 %v6670_v48  ;;  %v4343_v20 = vsub.f32 %v4341_v39, %v4342_v30  ;;  %v6544_v3 = vpack.c.bf16 %v4349_v60, %v4342_v30 }
 0x722   :  { %6515 = vmatpush3.bf16.msra.mxu0 %v7625_v37  ;;  %v4251_v37 = vld [vmem:[%s7815_s9 + $0x10] sm:$0xff] }
 0x723   :  { %6516 = vmatprep.subr.bf16.mxu0 %v6670_v48  ;;  %v4344_v61 = vand.u32 4294901760, %v4343_v20 }
 0x725   :  { %v6526_v28 = vpack.c.bf16 %v4351_v27, %v4344_v61 }
 0x726   :  { %6518 = vmatpush3.bf16.msra.mxu0 %v7645_v47  ;;  %v4267_v47 = vand.u32 4294901760, %v4251_v37 }
 0x728   :  { %v6523_v22 = vpack.c.bf16 %v4270_v56, %v4267_v47  ;;  %v4355_v9 = vsub.f32 %v4251_v37, %v4267_v47 }
 0x729   :  { %5899 = vmatmul.mubr.f32.vlgmr.msra.gmra.mrb[16].mxu0 %v3783_v57 }
 0x72a   :  { %6524 = vmatpush3.bf16.msra.mxu1 %v6523_v22  ;;  %v4356_v17 = vand.u32 4294901760, %v4355_v9  ;;  %v6535_v45 = vpack.c.bf16 %v4362_v19, %v4355_v9 }
 0x72b   :  { %6525 = vmatprep.subr.bf16.mxu1 %v6670_v48 }
 0x72c   :  { %v4357_v6 = vsub.f32 %v4355_v9, %v4356_v17  ;;  %v6547_v15 = vpack.c.bf16 %v4363_v62, %v4356_v17 }
 0x72e   :  { %v4358_v34 = vand.u32 4294901760, %v4357_v6 }
 0x730   :  { %v6529_v29 = vpack.c.bf16 %v4365_v58, %v4358_v34 }
 0x7fc   :  { %v4243_v33 = vpop.f32.mrb[16].mxu0 }
 0x7fd   :  { %v6565_v55 = vadd.f32 %v4777_v13, %v4243_v33  ;;  %v5900_v44 = vpop.f32.mrb[17].mxu0 }
 0x7ff   :  { %v4247_v40 = vmul.f32 0.01, %v6565_v55 }
 0x801   :  { %v4248_v50 = vmax.f32 %v6565_v55, %v4247_v40 }
 0x803   :  { %v4258_v5 = vsel %vm2174_vm3, %v4248_v50, 0 }
 0x804   :  { %v4329_v21 = vand.u32 4294901760, %v4258_v5 }
 0x806   :  { %v4330_v7 = vsub.f32 %v4258_v5, %v4329_v21 }
 0x808   :  { %v4331_v26 = vand.u32 4294901760, %v4330_v7 }
 0x80a   :  { %v4332_v42 = vsub.f32 %v4330_v7, %v4331_v26 }
 0x80c   :  { %v4333_v2 = vand.u32 4294901760, %v4332_v42 }
 0x80e   :  { %5910 = vmatmul.mubr.f32.vlgmr.msra.gmra.mrb[18].mxu1 %v4333_v2 }
 0x80f   :  { %6527 = vmatpush3.bf16.msra.mxu1 %v6526_v28  ;;  %5920 = vmatprep.mubr.msk.f32.mxu1 %vm6668_vm4, %v6667_v54 }
 0x810   :  { %6528 = vmatprep.subr.bf16.mxu1 %v6670_v48 }
 0x813   :  { %6530 = vmatpush3.bf16.msra.mxu1 %v6529_v29 }
 0x814   :  { %6531 = vmatprep.subr.bf16.mxu1 %v6670_v48 }
 0x816   :  { %5921 = vmatmul.mubr.f32.vlgmr.msra.gmra.mrb[18].mxu1 %v4329_v21 }
 0x817   :  { %6533 = vmatpush3.bf16.msra.mxu1 %v6532_v24  ;;  %5931 = vmatprep.mubr.msk.f32.mxu1 %vm6668_vm4, %v6667_v54 }
 0x818   :  { %6534 = vmatprep.subr.bf16.mxu1 %v6670_v48 }
 0x81b   :  { %6536 = vmatpush3.bf16.msra.mxu1 %v6535_v45 }
 0x81c   :  { %6537 = vmatprep.subr.bf16.mxu1 %v6670_v48 }
 0x81e   :  { %5932 = vmatmul.mubr.f32.vlgmr.msra.gmra.mrb[18].mxu1 %v4330_v7 }
 0x81f   :  { %6539 = vmatpush3.bf16.msra.mxu1 %v7755_v49  ;;  %5942 = vmatprep.mubr.msk.f32.mxu1 %vm6668_vm4, %v6667_v54 }
 0x820   :  { %6540 = vmatprep.subr.bf16.mxu1 %v6670_v48 }
 0x823   :  { %6542 = vmatpush3.bf16.msra.mxu1 %v6523_v22 }
 0x824   :  { %6543 = vmatprep.subr.bf16.mxu1 %v6670_v48 }
 0x826   :  { %5943 = vmatmul.mubr.f32.vlgmr.msra.gmra.mrb[18].mxu1 %v4331_v26 }
 0x827   :  { %6545 = vmatpush3.bf16.msra.mxu1 %v6544_v3  ;;  %5953 = vmatprep.mubr.msk.f32.mxu1 %vm6668_vm4, %v6667_v54 }
 0x828   :  { %6546 = vmatprep.subr.bf16.mxu1 %v6670_v48 }
 0x82b   :  { %6548 = vmatpush3.bf16.msra.mxu1 %v6547_v15 }
 0x82c   :  { %6549 = vmatprep.subr.bf16.mxu1 %v6670_v48 }
 0x82e   :  { %5954 = vmatmul.mubr.f32.vlgmr.msra.gmra.mrb[18].mxu1 %v4329_v21 }
 0x82f   :  { %6551 = vmatpush3.bf16.msra.mxu1 %v7755_v49  ;;  %5964 = vmatprep.mubr.msk.f32.mxu1 %vm6668_vm4, %v6667_v54 }
 0x830   :  { %6552 = vmatprep.subr.bf16.mxu1 %v6670_v48 }
 0x833   :  { %6554 = vmatpush3.bf16.msra.mxu1 %v6523_v22 }
 0x836   :  { %5965 = vmatmul.mubr.f32.vlgmr.msra.gmra.mrb[18].mxu1 %v4329_v21 }
 0x909   :  { %v4741_v53 = vpop.f32.mrb[18].mxu1 }
 0x90a   :  { %v6566_v18 = vadd.f32 %v4778_v35, %v4741_v53  ;;  %v5966_v52 = vpop.f32.mrb[19].mxu1 }
 0x90c   :  { %4753 = vrot.lane.b32.xlu0 %v6566_v18, %s6671_s13 }
 0x97e   :  { %v4754_v59 = vpop.permute.xlu0 %4753 }
 0x97f   :  { %4757 = vst.msk [vmem:[#allocation2] sm:$0xff] %vm4756_vm7, %v4754_v59 }
 0x980   :  { %6654 = shalt.err (!%p6651_p4)
}
 0x981   :  { %s6655_s17 = scalar_lea.hbm %s7817_s11, 128 }
 0x982   :  { %p6656_p5 = scmp.ne.s32.totalorder %s7817_s11, %s6655_s17  ;;  %p6659_p6 = scmp.lt.u32.totalorder %s6655_s17, %s7817_s11 }
 0x984   :  { %p6661_p7 = pnand %p6659_p6, %p6656_p5 }
 0x986   :  { %6664 = shalt.err (!%p6661_p7)
}
 0x987   :  { %4767 = dma.vmem_to_hbm [thread:$0]  %s4765_s14, 128, %s7817_s11, [#allocation3]  }
 0x988   :  { %6665 = dma.done.wait [#allocation3], 128  }
 0x989   :  { %6666 = vsyncadd [#allocation3], 4294967168 }
 0x98a   :  { %4771 = vsyncpa [#allocation3], 1 }

</bundles_post_ra>
